<compile_context>
chip_gen: v6e
topology: v6e:2x2x1
jax: 0.10.0
libtpu: 0.0.40
codegen_flags: <defaults>
</compile_context>

<pallas_src>
import functools

import numpy as np

import jax
import jax.numpy as jnp
from jax import lax
from jax.experimental import pallas as pl
from jax.experimental.pallas import tpu as pltpu


# ---------------------------------------------------------------------------
# Fused kernel: conv3x3+ReLU -> conv3x3+ReLU -> maxpool2x2 (ceil), per image
# ---------------------------------------------------------------------------
def _fused_kernel(x_ref, w1_ref, b1_ref, w2_ref, b2_ref, m_ref,
                  conv_ref, pool_ref, *, H, W, Ho, Wo):
    """Channel-major (C, H*W) formulation.

    x_ref   : (1, Cin, H*W)   f32   input image (flat spatial on lanes)
    w1_ref  : (9, Cout, Cin)  bf16/f32  conv1 per-tap weights (t = kh*3+kw)
    b1_ref  : (Cout, 1)       f32
    w2_ref  : (9, Cout, Cout) bf16/f32  conv2 per-tap weights
    b2_ref  : (Cout, 1)       f32
    m_ref   : (9, 1, H*W)     f32   {0,1} halo masks per tap (zero padding)
    conv_ref: (1, Cout, H*W)  f32   conv2 output (lane-dense store)
    pool_ref: (1, Cout, Ho*Wo)f32   maxpooled output
    """
    P = H * W
    Cout = conv_ref.shape[1]
    cdt = w1_ref.dtype                                   # MXU operand dtype
    prec = (lax.Precision.HIGHEST if cdt == jnp.float32
            else lax.Precision.DEFAULT)

    def conv3x3_relu(src, w_ref, b_ref):
        """src: (C, P) f32.  9 accumulating matmuls, shifted operands via
        pltpu.roll + halo mask (no im2col concat, no padded scratch)."""
        acc = None
        for t in range(9):
            dy, dx = t // 3 - 1, t % 3 - 1
            delta = dy * W + dx
            if delta == 0:                               # center tap: no shift
                tap = src
            else:
                tap = pltpu.roll(src, shift=(-delta) % P, axis=1)
                tap = tap * m_ref[t]                     # zero the halo
            # (Cout, C) x (C, P) -> (Cout, P), f32 accumulate on the MXU.
            part = jnp.dot(w_ref[t], tap.astype(cdt),
                           preferred_element_type=jnp.float32,
                           precision=prec)
            acc = part if acc is None else acc + part
        return jnp.maximum(acc + b_ref[...], 0.0)        # bias + ReLU, f32

    x = x_ref[0]                                         # (Cin, P) f32
    h = conv3x3_relu(x, w1_ref, b1_ref)                  # conv1 act, stays in VMEM temps
    y = conv3x3_relu(h, w2_ref, b2_ref)                  # conv2 act (Cout, P) f32
    conv_ref[0] = y                                      # lane-dense store

    # ---- maxpool 2x2 / stride 2 / ceil_mode=True (tiny fused epilogue) ----
    # Work in an (H, W, C) view: the two small transposes below are cheap and
    # every reshape keeps the minormost (lane) dimension intact.
    y_hwc = y.T.reshape(H, W, Cout)
    if W % 2:   # ceil-mode overhang: zero pad is exact because y >= 0 (ReLU)
        y_hwc = jnp.concatenate(
            [y_hwc, jnp.zeros((H, 1, Cout), y_hwc.dtype)], axis=1)
    if H % 2:
        y_hwc = jnp.concatenate(
            [y_hwc, jnp.zeros((1, y_hwc.shape[1], Cout), y_hwc.dtype)], axis=0)
    y4 = y_hwc.reshape(2 * Ho, Wo, 2, Cout)
    mw = jnp.maximum(y4[:, :, 0, :], y4[:, :, 1, :])     # pool along W (views)
    y5 = mw.reshape(Ho, 2, Wo, Cout)
    mh = jnp.maximum(y5[:, 0], y5[:, 1])                 # pool along H (views)
    pool_ref[0] = mh.reshape(Ho * Wo, Cout).T            # (Cout, Ho*Wo) store


# ---------------------------------------------------------------------------
# Wrapper helpers
# ---------------------------------------------------------------------------
def _prep_taps(w, cdt):
    """(Cout, Cin, 3, 3) PyTorch OIHW -> (9, Cout, Cin) per-tap matrices."""
    cout, cin = w.shape[0], w.shape[1]
    return jnp.transpose(w, (2, 3, 0, 1)).reshape(9, cout, cin).astype(cdt)


def _tap_masks(H, W):
    """{0,1} validity masks (9, 1, H*W): zero outside the image per tap."""
    yy = np.repeat(np.arange(H), W)
    xx = np.tile(np.arange(W), H)
    ms = np.zeros((9, 1, H * W), np.float32)
    for t in range(9):
        dy, dx = t // 3 - 1, t % 3 - 1
        valid = ((yy + dy >= 0) & (yy + dy < H) &
                 (xx + dx >= 0) & (xx + dx < W))
        ms[t, 0] = valid.astype(np.float32)
    return jnp.asarray(ms)


def _fused_forward_flat(x_flat, w1_taps, b1, w2_taps, b2, masks, *, H, W):
    """x_flat: (N, Cin, H*W) f32.  Returns flat (N, Cout, H*W)/(N, Cout, Ho*Wo)."""
    N, Cin, P = x_flat.shape
    Cout = w1_taps.shape[1]
    Ho, Wo = -(-H // 2), -(-W // 2)                      # ceil division
    Po = Ho * Wo

    itemsize = jnp.dtype(w1_taps.dtype).itemsize
    blk_bytes = (Cin * P * 4 + Cout * P * 4 + Cout * Po * 4
                 + 9 * Cout * (Cin + Cout) * itemsize
                 + 9 * P * 4 + 2 * Cout * 4)
    vmem_limit = int(min(96 * 2 ** 20, 8 * 2 ** 20 + 4 * blk_bytes))

    kernel = functools.partial(_fused_kernel, H=H, W=W, Ho=Ho, Wo=Wo)

    conv_flat, pool_flat = pl.pallas_call(
        kernel,
        out_shape=(
            jax.ShapeDtypeStruct((N, Cout, P), jnp.float32),
            jax.ShapeDtypeStruct((N, Cout, Po), jnp.float32),
        ),
        grid=(N,),
        in_specs=[
            pl.BlockSpec((1, Cin, P), lambda n: (n, 0, 0)),       # x
            pl.BlockSpec((9, Cout, Cin), lambda n: (0, 0, 0)),    # w1 taps
            pl.BlockSpec((Cout, 1), lambda n: (0, 0)),            # b1
            pl.BlockSpec((9, Cout, Cout), lambda n: (0, 0, 0)),   # w2 taps
            pl.BlockSpec((Cout, 1), lambda n: (0, 0)),            # b2
            pl.BlockSpec((9, 1, P), lambda n: (0, 0, 0)),         # halo masks
        ],
        out_specs=(
            pl.BlockSpec((1, Cout, P), lambda n: (n, 0, 0)),
            pl.BlockSpec((1, Cout, Po), lambda n: (n, 0, 0)),
        ),
        compiler_params=pltpu.CompilerParams(
            dimension_semantics=("parallel",),
            vmem_limit_bytes=vmem_limit),
    )(x_flat, w1_taps, b1.reshape(Cout, 1), w2_taps, b2.reshape(Cout, 1), masks)
    return conv_flat, pool_flat


def _fold_bn(w, b, gamma, beta, mean, var, eps=1e-5):
    """Fold eval-mode BatchNorm2d into the preceding conv (OIHW weights)."""
    scale = gamma / jnp.sqrt(var + eps)                  # (Cout,)
    return w * scale[:, None, None, None], (b - mean) * scale + beta


def init_params(key, in_size, out_size, is_batchnorm):
    keys = jax.random.split(key, 8)
    # PyTorch OIHW layout (Cout, Cin, kh, kw); deterministic synthetic init.
    w1 = jax.random.normal(keys[0], (out_size, in_size, 3, 3), jnp.float32) * 0.1
    b1 = jax.random.normal(keys[1], (out_size,), jnp.float32) * 0.1
    w2 = jax.random.normal(keys[2], (out_size, out_size, 3, 3), jnp.float32) * 0.1
    b2 = jax.random.normal(keys[3], (out_size,), jnp.float32) * 0.1
    if is_batchnorm:
        g1 = 1.0 + 0.05 * jax.random.normal(keys[4], (out_size,), jnp.float32)
        be1 = 0.05 * jax.random.normal(keys[5], (out_size,), jnp.float32)
        g2 = 1.0 + 0.05 * jax.random.normal(keys[6], (out_size,), jnp.float32)
        be2 = 0.05 * jax.random.normal(keys[7], (out_size,), jnp.float32)
        zeros = jnp.zeros((out_size,), jnp.float32)
        ones = jnp.ones((out_size,), jnp.float32)
        w1, b1 = _fold_bn(w1, b1, g1, be1, zeros, ones)
        w2, b2 = _fold_bn(w2, b2, g2, be2, zeros, ones)
    return {"w1": w1, "b1": b1, "w2": w2, "b2": b2}


@functools.partial(jax.jit, static_argnames=("use_bf16",))
def conv2relu_conv2relu_down(x_nchw, params, use_bf16=True):
    """Full module forward.  NCHW in / NCHW out (no layout transposes: the
    kernel is channel-major, only free reshapes of contiguous dims happen)."""
    N, Cin, H, W = x_nchw.shape
    Cout = params["w1"].shape[0]
    cdt = jnp.bfloat16 if use_bf16 else jnp.float32

    w1_taps = _prep_taps(params["w1"], cdt)
    w2_taps = _prep_taps(params["w2"], cdt)
    masks = _tap_masks(H, W)

    conv_flat, pool_flat = _fused_forward_flat(
        x_nchw.reshape(N, Cin, H * W),
        w1_taps, params["b1"], w2_taps, params["b2"], masks, H=H, W=W)

    Ho, Wo = -(-H // 2), -(-W // 2)
    return (conv_flat.reshape(N, Cout, H, W),
            pool_flat.reshape(N, Cout, Ho, Wo))


# ---------------------------------------------------------------------------
# Pure-JAX reference (for correctness check only)
# ---------------------------------------------------------------------------
def _reference(x, params):
    dn = ("NCHW", "OIHW", "NCHW")
    h = lax.conv_general_dilated(x, params["w1"], (1, 1), "SAME",
                                 dimension_numbers=dn)
    h = jax.nn.relu(h + params["b1"][None, :, None, None])
    y = lax.conv_general_dilated(h, params["w2"], (1, 1), "SAME",
                                 dimension_numbers=dn)
    y = jax.nn.relu(y + params["b2"][None, :, None, None])
    H, W = y.shape[2], y.shape[3]
    yp = jnp.pad(y, [(0, 0), (0, 0), (0, H % 2), (0, W % 2)],
                 constant_values=-jnp.inf)
    p = lax.reduce_window(yp, -jnp.inf, lax.max,
                          (1, 1, 2, 2), (1, 1, 2, 2), "VALID")
    return y, p


if __name__ == "__main__":
    key = jax.random.PRNGKey(0)
    k_x, k_p = jax.random.split(key)

    N, Cin, H, W = 2, 4, 16, 16
    Cout = 8
    is_batchnorm = True

    x = jax.random.normal(k_x, (N, Cin, H, W), jnp.float32)
    params = init_params(k_p, Cin, Cout, is_batchnorm)

    # Default (bf16 MXU operands) path.
    conv_bf, pool_bf = conv2relu_conv2relu_down(x, params)
    conv_bf = jax.block_until_ready(conv_bf)
    pool_bf = jax.block_until_ready(pool_bf)
    # f32-exact path.
    conv_fp, pool_fp = conv2relu_conv2relu_down(x, params, use_bf16=False)
    conv_fp = jax.block_until_ready(conv_fp)
    pool_fp = jax.block_until_ready(pool_fp)
    # Pure-JAX reference.
    conv_r, pool_r = _reference(x, params)

    Ho, Wo = (H + 1) // 2, (W + 1) // 2
    assert conv_bf.shape == (N, Cout, H, W)
    assert pool_bf.shape == (N, Cout, Ho, Wo)
    assert bool(jnp.all(conv_bf >= 0.0)) and bool(jnp.all(pool_bf >= 0.0))
    assert bool(jnp.all(pool_bf <= jnp.max(conv_bf) + 1e-6))
    assert bool(jnp.allclose(conv_fp, conv_r, atol=5e-3, rtol=5e-3))
    assert bool(jnp.allclose(pool_fp, pool_r, atol=5e-3, rtol=5e-3))
    assert bool(jnp.allclose(conv_bf, conv_r, atol=8e-2, rtol=8e-2))
    assert bool(jnp.allclose(pool_bf, pool_r, atol=8e-2, rtol=8e-2))

    print("KERNEL_OK")
</pallas_src>

<mosaic_0001>
module attributes {stable_mosaic.version = 11 : i64} {
  func.func @_fused_kernel(%arg0: i32, %arg1: memref<1x4x256xf32, #tpu.memory_space<vmem>>, %arg2: memref<9x8x4xbf16, #tpu.memory_space<vmem>>, %arg3: memref<8x1xf32, #tpu.memory_space<vmem>>, %arg4: memref<9x8x8xbf16, #tpu.memory_space<vmem>>, %arg5: memref<8x1xf32, #tpu.memory_space<vmem>>, %arg6: memref<9x1x256xf32, #tpu.memory_space<vmem>>, %arg7: memref<1x8x256xf32, #tpu.memory_space<vmem>>, %arg8: memref<1x8x64xf32, #tpu.memory_space<vmem>>) attributes {dimension_semantics = [#tpu.dimension_semantics<parallel>], iteration_bounds = array<i64: 2>, scalar_prefetch = 0 : i64, scratch_operands = 0 : i64, tpu.core_type = #tpu.core_type<tc>, window_params = [{transform_indices = @transform_0, window_bounds = array<i64: 1, 4, 256>}, {pipeline_mode = #tpu.pipeline_mode<synchronous>, transform_indices = @transform_1, window_bounds = array<i64: 9, 8, 4>}, {pipeline_mode = #tpu.pipeline_mode<synchronous>, transform_indices = @transform_2, window_bounds = array<i64: 8, 1>}, {pipeline_mode = #tpu.pipeline_mode<synchronous>, transform_indices = @transform_3, window_bounds = array<i64: 9, 8, 8>}, {pipeline_mode = #tpu.pipeline_mode<synchronous>, transform_indices = @transform_4, window_bounds = array<i64: 8, 1>}, {pipeline_mode = #tpu.pipeline_mode<synchronous>, transform_indices = @transform_5, window_bounds = array<i64: 9, 1, 256>}, {transform_indices = @transform_6, window_bounds = array<i64: 1, 8, 256>}, {transform_indices = @transform_7, window_bounds = array<i64: 1, 8, 64>}]} {
    %c0 = arith.constant 0 : index
    %c0_0 = arith.constant 0 : index
    %c0_1 = arith.constant 0 : index
    %0 = vector.load %arg1[%c0, %c0_0, %c0_1] : memref<1x4x256xf32, #tpu.memory_space<vmem>>, vector<1x4x256xf32>
    %1 = vector.shape_cast %0 : vector<1x4x256xf32> to vector<4x256xf32>
    %c17_i32 = arith.constant 17 : i32
    %2 = tpu.dynamic_rotate %1 by %c17_i32 dim 1 : vector<4x256xf32>, i32 -> vector<4x256xf32>
    %c0_2 = arith.constant 0 : index
    %c0_3 = arith.constant 0 : index
    %c0_4 = arith.constant 0 : index
    %3 = vector.load %arg6[%c0_2, %c0_3, %c0_4] : memref<9x1x256xf32, #tpu.memory_space<vmem>>, vector<1x1x256xf32>
    %4 = vector.shape_cast %3 : vector<1x1x256xf32> to vector<1x256xf32>
    %5 = vector.broadcast %4 : vector<1x256xf32> to vector<4x256xf32>
    %6 = arith.mulf %2, %5 : vector<4x256xf32>
    %c0_5 = arith.constant 0 : index
    %c0_6 = arith.constant 0 : index
    %c0_7 = arith.constant 0 : index
    %7 = vector.load %arg2[%c0_5, %c0_6, %c0_7] : memref<9x8x4xbf16, #tpu.memory_space<vmem>>, vector<1x8x4xbf16>
    %8 = vector.shape_cast %7 : vector<1x8x4xbf16> to vector<8x4xbf16>
    %9 = arith.truncf %6 : vector<4x256xf32> to vector<4x256xbf16>
    %cst = arith.constant dense<0.000000e+00> : vector<8x256xf32>
    %10 = tpu.matmul %8, %9, %cst {dimension_numbers = #tpu.dot_dimension_numbers<[1], [0], [0], [1], [0, 0, 1, 1], [], []>} : vector<8x4xbf16>, vector<4x256xbf16>, vector<8x256xf32> -> vector<8x256xf32>
    %c16_i32 = arith.constant 16 : i32
    %11 = tpu.dynamic_rotate %1 by %c16_i32 dim 1 : vector<4x256xf32>, i32 -> vector<4x256xf32>
    %c1 = arith.constant 1 : index
    %c0_8 = arith.constant 0 : index
    %c0_9 = arith.constant 0 : index
    %12 = vector.load %arg6[%c1, %c0_8, %c0_9] : memref<9x1x256xf32, #tpu.memory_space<vmem>>, vector<1x1x256xf32>
    %13 = vector.shape_cast %12 : vector<1x1x256xf32> to vector<1x256xf32>
    %14 = vector.broadcast %13 : vector<1x256xf32> to vector<4x256xf32>
    %15 = arith.mulf %11, %14 : vector<4x256xf32>
    %c1_10 = arith.constant 1 : index
    %c0_11 = arith.constant 0 : index
    %c0_12 = arith.constant 0 : index
    %16 = vector.load %arg2[%c1_10, %c0_11, %c0_12] : memref<9x8x4xbf16, #tpu.memory_space<vmem>>, vector<1x8x4xbf16>
    %17 = vector.shape_cast %16 : vector<1x8x4xbf16> to vector<8x4xbf16>
    %18 = arith.truncf %15 : vector<4x256xf32> to vector<4x256xbf16>
    %cst_13 = arith.constant dense<0.000000e+00> : vector<8x256xf32>
    %19 = tpu.matmul %17, %18, %cst_13 {dimension_numbers = #tpu.dot_dimension_numbers<[1], [0], [0], [1], [0, 0, 1, 1], [], []>} : vector<8x4xbf16>, vector<4x256xbf16>, vector<8x256xf32> -> vector<8x256xf32>
    %20 = arith.addf %10, %19 : vector<8x256xf32>
    %c15_i32 = arith.constant 15 : i32
    %21 = tpu.dynamic_rotate %1 by %c15_i32 dim 1 : vector<4x256xf32>, i32 -> vector<4x256xf32>
    %c2 = arith.constant 2 : index
    %c0_14 = arith.constant 0 : index
    %c0_15 = arith.constant 0 : index
    %22 = vector.load %arg6[%c2, %c0_14, %c0_15] : memref<9x1x256xf32, #tpu.memory_space<vmem>>, vector<1x1x256xf32>
    %23 = vector.shape_cast %22 : vector<1x1x256xf32> to vector<1x256xf32>
    %24 = vector.broadcast %23 : vector<1x256xf32> to vector<4x256xf32>
    %25 = arith.mulf %21, %24 : vector<4x256xf32>
    %c2_16 = arith.constant 2 : index
    %c0_17 = arith.constant 0 : index
    %c0_18 = arith.constant 0 : index
    %26 = vector.load %arg2[%c2_16, %c0_17, %c0_18] : memref<9x8x4xbf16, #tpu.memory_space<vmem>>, vector<1x8x4xbf16>
    %27 = vector.shape_cast %26 : vector<1x8x4xbf16> to vector<8x4xbf16>
    %28 = arith.truncf %25 : vector<4x256xf32> to vector<4x256xbf16>
    %cst_19 = arith.constant dense<0.000000e+00> : vector<8x256xf32>
    %29 = tpu.matmul %27, %28, %cst_19 {dimension_numbers = #tpu.dot_dimension_numbers<[1], [0], [0], [1], [0, 0, 1, 1], [], []>} : vector<8x4xbf16>, vector<4x256xbf16>, vector<8x256xf32> -> vector<8x256xf32>
    %30 = arith.addf %20, %29 : vector<8x256xf32>
    %c1_i32 = arith.constant 1 : i32
    %31 = tpu.dynamic_rotate %1 by %c1_i32 dim 1 : vector<4x256xf32>, i32 -> vector<4x256xf32>
    %c3 = arith.constant 3 : index
    %c0_20 = arith.constant 0 : index
    %c0_21 = arith.constant 0 : index
    %32 = vector.load %arg6[%c3, %c0_20, %c0_21] : memref<9x1x256xf32, #tpu.memory_space<vmem>>, vector<1x1x256xf32>
    %33 = vector.shape_cast %32 : vector<1x1x256xf32> to vector<1x256xf32>
    %34 = vector.broadcast %33 : vector<1x256xf32> to vector<4x256xf32>
    %35 = arith.mulf %31, %34 : vector<4x256xf32>
    %c3_22 = arith.constant 3 : index
    %c0_23 = arith.constant 0 : index
    %c0_24 = arith.constant 0 : index
    %36 = vector.load %arg2[%c3_22, %c0_23, %c0_24] : memref<9x8x4xbf16, #tpu.memory_space<vmem>>, vector<1x8x4xbf16>
    %37 = vector.shape_cast %36 : vector<1x8x4xbf16> to vector<8x4xbf16>
    %38 = arith.truncf %35 : vector<4x256xf32> to vector<4x256xbf16>
    %cst_25 = arith.constant dense<0.000000e+00> : vector<8x256xf32>
    %39 = tpu.matmul %37, %38, %cst_25 {dimension_numbers = #tpu.dot_dimension_numbers<[1], [0], [0], [1], [0, 0, 1, 1], [], []>} : vector<8x4xbf16>, vector<4x256xbf16>, vector<8x256xf32> -> vector<8x256xf32>
    %40 = arith.addf %30, %39 : vector<8x256xf32>
    %c4 = arith.constant 4 : index
    %c0_26 = arith.constant 0 : index
    %c0_27 = arith.constant 0 : index
    %41 = vector.load %arg2[%c4, %c0_26, %c0_27] : memref<9x8x4xbf16, #tpu.memory_space<vmem>>, vector<1x8x4xbf16>
    %42 = vector.shape_cast %41 : vector<1x8x4xbf16> to vector<8x4xbf16>
    %43 = arith.truncf %1 : vector<4x256xf32> to vector<4x256xbf16>
    %cst_28 = arith.constant dense<0.000000e+00> : vector<8x256xf32>
    %44 = tpu.matmul %42, %43, %cst_28 {dimension_numbers = #tpu.dot_dimension_numbers<[1], [0], [0], [1], [0, 0, 1, 1], [], []>} : vector<8x4xbf16>, vector<4x256xbf16>, vector<8x256xf32> -> vector<8x256xf32>
    %45 = arith.addf %40, %44 : vector<8x256xf32>
    %c255_i32 = arith.constant 255 : i32
    %46 = tpu.dynamic_rotate %1 by %c255_i32 dim 1 : vector<4x256xf32>, i32 -> vector<4x256xf32>
    %c5 = arith.constant 5 : index
    %c0_29 = arith.constant 0 : index
    %c0_30 = arith.constant 0 : index
    %47 = vector.load %arg6[%c5, %c0_29, %c0_30] : memref<9x1x256xf32, #tpu.memory_space<vmem>>, vector<1x1x256xf32>
    %48 = vector.shape_cast %47 : vector<1x1x256xf32> to vector<1x256xf32>
    %49 = vector.broadcast %48 : vector<1x256xf32> to vector<4x256xf32>
    %50 = arith.mulf %46, %49 : vector<4x256xf32>
    %c5_31 = arith.constant 5 : index
    %c0_32 = arith.constant 0 : index
    %c0_33 = arith.constant 0 : index
    %51 = vector.load %arg2[%c5_31, %c0_32, %c0_33] : memref<9x8x4xbf16, #tpu.memory_space<vmem>>, vector<1x8x4xbf16>
    %52 = vector.shape_cast %51 : vector<1x8x4xbf16> to vector<8x4xbf16>
    %53 = arith.truncf %50 : vector<4x256xf32> to vector<4x256xbf16>
    %cst_34 = arith.constant dense<0.000000e+00> : vector<8x256xf32>
    %54 = tpu.matmul %52, %53, %cst_34 {dimension_numbers = #tpu.dot_dimension_numbers<[1], [0], [0], [1], [0, 0, 1, 1], [], []>} : vector<8x4xbf16>, vector<4x256xbf16>, vector<8x256xf32> -> vector<8x256xf32>
    %55 = arith.addf %45, %54 : vector<8x256xf32>
    %c241_i32 = arith.constant 241 : i32
    %56 = tpu.dynamic_rotate %1 by %c241_i32 dim 1 : vector<4x256xf32>, i32 -> vector<4x256xf32>
    %c6 = arith.constant 6 : index
    %c0_35 = arith.constant 0 : index
    %c0_36 = arith.constant 0 : index
    %57 = vector.load %arg6[%c6, %c0_35, %c0_36] : memref<9x1x256xf32, #tpu.memory_space<vmem>>, vector<1x1x256xf32>
    %58 = vector.shape_cast %57 : vector<1x1x256xf32> to vector<1x256xf32>
    %59 = vector.broadcast %58 : vector<1x256xf32> to vector<4x256xf32>
    %60 = arith.mulf %56, %59 : vector<4x256xf32>
    %c6_37 = arith.constant 6 : index
    %c0_38 = arith.constant 0 : index
    %c0_39 = arith.constant 0 : index
    %61 = vector.load %arg2[%c6_37, %c0_38, %c0_39] : memref<9x8x4xbf16, #tpu.memory_space<vmem>>, vector<1x8x4xbf16>
    %62 = vector.shape_cast %61 : vector<1x8x4xbf16> to vector<8x4xbf16>
    %63 = arith.truncf %60 : vector<4x256xf32> to vector<4x256xbf16>
    %cst_40 = arith.constant dense<0.000000e+00> : vector<8x256xf32>
    %64 = tpu.matmul %62, %63, %cst_40 {dimension_numbers = #tpu.dot_dimension_numbers<[1], [0], [0], [1], [0, 0, 1, 1], [], []>} : vector<8x4xbf16>, vector<4x256xbf16>, vector<8x256xf32> -> vector<8x256xf32>
    %65 = arith.addf %55, %64 : vector<8x256xf32>
    %c240_i32 = arith.constant 240 : i32
    %66 = tpu.dynamic_rotate %1 by %c240_i32 dim 1 : vector<4x256xf32>, i32 -> vector<4x256xf32>
    %c7 = arith.constant 7 : index
    %c0_41 = arith.constant 0 : index
    %c0_42 = arith.constant 0 : index
    %67 = vector.load %arg6[%c7, %c0_41, %c0_42] : memref<9x1x256xf32, #tpu.memory_space<vmem>>, vector<1x1x256xf32>
    %68 = vector.shape_cast %67 : vector<1x1x256xf32> to vector<1x256xf32>
    %69 = vector.broadcast %68 : vector<1x256xf32> to vector<4x256xf32>
    %70 = arith.mulf %66, %69 : vector<4x256xf32>
    %c7_43 = arith.constant 7 : index
    %c0_44 = arith.constant 0 : index
    %c0_45 = arith.constant 0 : index
    %71 = vector.load %arg2[%c7_43, %c0_44, %c0_45] : memref<9x8x4xbf16, #tpu.memory_space<vmem>>, vector<1x8x4xbf16>
    %72 = vector.shape_cast %71 : vector<1x8x4xbf16> to vector<8x4xbf16>
    %73 = arith.truncf %70 : vector<4x256xf32> to vector<4x256xbf16>
    %cst_46 = arith.constant dense<0.000000e+00> : vector<8x256xf32>
    %74 = tpu.matmul %72, %73, %cst_46 {dimension_numbers = #tpu.dot_dimension_numbers<[1], [0], [0], [1], [0, 0, 1, 1], [], []>} : vector<8x4xbf16>, vector<4x256xbf16>, vector<8x256xf32> -> vector<8x256xf32>
    %75 = arith.addf %65, %74 : vector<8x256xf32>
    %c239_i32 = arith.constant 239 : i32
    %76 = tpu.dynamic_rotate %1 by %c239_i32 dim 1 : vector<4x256xf32>, i32 -> vector<4x256xf32>
    %c8 = arith.constant 8 : index
    %c0_47 = arith.constant 0 : index
    %c0_48 = arith.constant 0 : index
    %77 = vector.load %arg6[%c8, %c0_47, %c0_48] : memref<9x1x256xf32, #tpu.memory_space<vmem>>, vector<1x1x256xf32>
    %78 = vector.shape_cast %77 : vector<1x1x256xf32> to vector<1x256xf32>
    %79 = vector.broadcast %78 : vector<1x256xf32> to vector<4x256xf32>
    %80 = arith.mulf %76, %79 : vector<4x256xf32>
    %c8_49 = arith.constant 8 : index
    %c0_50 = arith.constant 0 : index
    %c0_51 = arith.constant 0 : index
    %81 = vector.load %arg2[%c8_49, %c0_50, %c0_51] : memref<9x8x4xbf16, #tpu.memory_space<vmem>>, vector<1x8x4xbf16>
    %82 = vector.shape_cast %81 : vector<1x8x4xbf16> to vector<8x4xbf16>
    %83 = arith.truncf %80 : vector<4x256xf32> to vector<4x256xbf16>
    %cst_52 = arith.constant dense<0.000000e+00> : vector<8x256xf32>
    %84 = tpu.matmul %82, %83, %cst_52 {dimension_numbers = #tpu.dot_dimension_numbers<[1], [0], [0], [1], [0, 0, 1, 1], [], []>} : vector<8x4xbf16>, vector<4x256xbf16>, vector<8x256xf32> -> vector<8x256xf32>
    %85 = arith.addf %75, %84 : vector<8x256xf32>
    %c0_53 = arith.constant 0 : index
    %c0_54 = arith.constant 0 : index
    %86 = vector.load %arg3[%c0_53, %c0_54] : memref<8x1xf32, #tpu.memory_space<vmem>>, vector<8x1xf32>
    %87 = vector.broadcast %86 : vector<8x1xf32> to vector<8x256xf32>
    %88 = arith.addf %85, %87 : vector<8x256xf32>
    %cst_55 = arith.constant 0.000000e+00 : f32
    %89 = vector.broadcast %cst_55 : f32 to vector<8x256xf32>
    %90 = arith.maximumf %88, %89 : vector<8x256xf32>
    %c17_i32_56 = arith.constant 17 : i32
    %91 = tpu.dynamic_rotate %90 by %c17_i32_56 dim 1 : vector<8x256xf32>, i32 -> vector<8x256xf32>
    %c0_57 = arith.constant 0 : index
    %c0_58 = arith.constant 0 : index
    %c0_59 = arith.constant 0 : index
    %92 = vector.load %arg6[%c0_57, %c0_58, %c0_59] : memref<9x1x256xf32, #tpu.memory_space<vmem>>, vector<1x1x256xf32>
    %93 = vector.shape_cast %92 : vector<1x1x256xf32> to vector<1x256xf32>
    %94 = vector.broadcast %93 : vector<1x256xf32> to vector<8x256xf32>
    %95 = arith.mulf %91, %94 : vector<8x256xf32>
    %c0_60 = arith.constant 0 : index
    %c0_61 = arith.constant 0 : index
    %c0_62 = arith.constant 0 : index
    %96 = vector.load %arg4[%c0_60, %c0_61, %c0_62] : memref<9x8x8xbf16, #tpu.memory_space<vmem>>, vector<1x8x8xbf16>
    %97 = vector.shape_cast %96 : vector<1x8x8xbf16> to vector<8x8xbf16>
    %98 = arith.truncf %95 : vector<8x256xf32> to vector<8x256xbf16>
    %cst_63 = arith.constant dense<0.000000e+00> : vector<8x256xf32>
    %99 = tpu.matmul %97, %98, %cst_63 {dimension_numbers = #tpu.dot_dimension_numbers<[1], [0], [0], [1], [0, 0, 1, 1], [], []>} : vector<8x8xbf16>, vector<8x256xbf16>, vector<8x256xf32> -> vector<8x256xf32>
    %c16_i32_64 = arith.constant 16 : i32
    %100 = tpu.dynamic_rotate %90 by %c16_i32_64 dim 1 : vector<8x256xf32>, i32 -> vector<8x256xf32>
    %c1_65 = arith.constant 1 : index
    %c0_66 = arith.constant 0 : index
    %c0_67 = arith.constant 0 : index
    %101 = vector.load %arg6[%c1_65, %c0_66, %c0_67] : memref<9x1x256xf32, #tpu.memory_space<vmem>>, vector<1x1x256xf32>
    %102 = vector.shape_cast %101 : vector<1x1x256xf32> to vector<1x256xf32>
    %103 = vector.broadcast %102 : vector<1x256xf32> to vector<8x256xf32>
    %104 = arith.mulf %100, %103 : vector<8x256xf32>
    %c1_68 = arith.constant 1 : index
    %c0_69 = arith.constant 0 : index
    %c0_70 = arith.constant 0 : index
    %105 = vector.load %arg4[%c1_68, %c0_69, %c0_70] : memref<9x8x8xbf16, #tpu.memory_space<vmem>>, vector<1x8x8xbf16>
    %106 = vector.shape_cast %105 : vector<1x8x8xbf16> to vector<8x8xbf16>
    %107 = arith.truncf %104 : vector<8x256xf32> to vector<8x256xbf16>
    %cst_71 = arith.constant dense<0.000000e+00> : vector<8x256xf32>
    %108 = tpu.matmul %106, %107, %cst_71 {dimension_numbers = #tpu.dot_dimension_numbers<[1], [0], [0], [1], [0, 0, 1, 1], [], []>} : vector<8x8xbf16>, vector<8x256xbf16>, vector<8x256xf32> -> vector<8x256xf32>
    %109 = arith.addf %99, %108 : vector<8x256xf32>
    %c15_i32_72 = arith.constant 15 : i32
    %110 = tpu.dynamic_rotate %90 by %c15_i32_72 dim 1 : vector<8x256xf32>, i32 -> vector<8x256xf32>
    %c2_73 = arith.constant 2 : index
    %c0_74 = arith.constant 0 : index
    %c0_75 = arith.constant 0 : index
    %111 = vector.load %arg6[%c2_73, %c0_74, %c0_75] : memref<9x1x256xf32, #tpu.memory_space<vmem>>, vector<1x1x256xf32>
    %112 = vector.shape_cast %111 : vector<1x1x256xf32> to vector<1x256xf32>
    %113 = vector.broadcast %112 : vector<1x256xf32> to vector<8x256xf32>
    %114 = arith.mulf %110, %113 : vector<8x256xf32>
    %c2_76 = arith.constant 2 : index
    %c0_77 = arith.constant 0 : index
    %c0_78 = arith.constant 0 : index
    %115 = vector.load %arg4[%c2_76, %c0_77, %c0_78] : memref<9x8x8xbf16, #tpu.memory_space<vmem>>, vector<1x8x8xbf16>
    %116 = vector.shape_cast %115 : vector<1x8x8xbf16> to vector<8x8xbf16>
    %117 = arith.truncf %114 : vector<8x256xf32> to vector<8x256xbf16>
    %cst_79 = arith.constant dense<0.000000e+00> : vector<8x256xf32>
    %118 = tpu.matmul %116, %117, %cst_79 {dimension_numbers = #tpu.dot_dimension_numbers<[1], [0], [0], [1], [0, 0, 1, 1], [], []>} : vector<8x8xbf16>, vector<8x256xbf16>, vector<8x256xf32> -> vector<8x256xf32>
    %119 = arith.addf %109, %118 : vector<8x256xf32>
    %c1_i32_80 = arith.constant 1 : i32
    %120 = tpu.dynamic_rotate %90 by %c1_i32_80 dim 1 : vector<8x256xf32>, i32 -> vector<8x256xf32>
    %c3_81 = arith.constant 3 : index
    %c0_82 = arith.constant 0 : index
    %c0_83 = arith.constant 0 : index
    %121 = vector.load %arg6[%c3_81, %c0_82, %c0_83] : memref<9x1x256xf32, #tpu.memory_space<vmem>>, vector<1x1x256xf32>
    %122 = vector.shape_cast %121 : vector<1x1x256xf32> to vector<1x256xf32>
    %123 = vector.broadcast %122 : vector<1x256xf32> to vector<8x256xf32>
    %124 = arith.mulf %120, %123 : vector<8x256xf32>
    %c3_84 = arith.constant 3 : index
    %c0_85 = arith.constant 0 : index
    %c0_86 = arith.constant 0 : index
    %125 = vector.load %arg4[%c3_84, %c0_85, %c0_86] : memref<9x8x8xbf16, #tpu.memory_space<vmem>>, vector<1x8x8xbf16>
    %126 = vector.shape_cast %125 : vector<1x8x8xbf16> to vector<8x8xbf16>
    %127 = arith.truncf %124 : vector<8x256xf32> to vector<8x256xbf16>
    %cst_87 = arith.constant dense<0.000000e+00> : vector<8x256xf32>
    %128 = tpu.matmul %126, %127, %cst_87 {dimension_numbers = #tpu.dot_dimension_numbers<[1], [0], [0], [1], [0, 0, 1, 1], [], []>} : vector<8x8xbf16>, vector<8x256xbf16>, vector<8x256xf32> -> vector<8x256xf32>
    %129 = arith.addf %119, %128 : vector<8x256xf32>
    %c4_88 = arith.constant 4 : index
    %c0_89 = arith.constant 0 : index
    %c0_90 = arith.constant 0 : index
    %130 = vector.load %arg4[%c4_88, %c0_89, %c0_90] : memref<9x8x8xbf16, #tpu.memory_space<vmem>>, vector<1x8x8xbf16>
    %131 = vector.shape_cast %130 : vector<1x8x8xbf16> to vector<8x8xbf16>
    %132 = arith.truncf %90 : vector<8x256xf32> to vector<8x256xbf16>
    %cst_91 = arith.constant dense<0.000000e+00> : vector<8x256xf32>
    %133 = tpu.matmul %131, %132, %cst_91 {dimension_numbers = #tpu.dot_dimension_numbers<[1], [0], [0], [1], [0, 0, 1, 1], [], []>} : vector<8x8xbf16>, vector<8x256xbf16>, vector<8x256xf32> -> vector<8x256xf32>
    %134 = arith.addf %129, %133 : vector<8x256xf32>
    %c255_i32_92 = arith.constant 255 : i32
    %135 = tpu.dynamic_rotate %90 by %c255_i32_92 dim 1 : vector<8x256xf32>, i32 -> vector<8x256xf32>
    %c5_93 = arith.constant 5 : index
    %c0_94 = arith.constant 0 : index
    %c0_95 = arith.constant 0 : index
    %136 = vector.load %arg6[%c5_93, %c0_94, %c0_95] : memref<9x1x256xf32, #tpu.memory_space<vmem>>, vector<1x1x256xf32>
    %137 = vector.shape_cast %136 : vector<1x1x256xf32> to vector<1x256xf32>
    %138 = vector.broadcast %137 : vector<1x256xf32> to vector<8x256xf32>
    %139 = arith.mulf %135, %138 : vector<8x256xf32>
    %c5_96 = arith.constant 5 : index
    %c0_97 = arith.constant 0 : index
    %c0_98 = arith.constant 0 : index
    %140 = vector.load %arg4[%c5_96, %c0_97, %c0_98] : memref<9x8x8xbf16, #tpu.memory_space<vmem>>, vector<1x8x8xbf16>
    %141 = vector.shape_cast %140 : vector<1x8x8xbf16> to vector<8x8xbf16>
    %142 = arith.truncf %139 : vector<8x256xf32> to vector<8x256xbf16>
    %cst_99 = arith.constant dense<0.000000e+00> : vector<8x256xf32>
    %143 = tpu.matmul %141, %142, %cst_99 {dimension_numbers = #tpu.dot_dimension_numbers<[1], [0], [0], [1], [0, 0, 1, 1], [], []>} : vector<8x8xbf16>, vector<8x256xbf16>, vector<8x256xf32> -> vector<8x256xf32>
    %144 = arith.addf %134, %143 : vector<8x256xf32>
    %c241_i32_100 = arith.constant 241 : i32
    %145 = tpu.dynamic_rotate %90 by %c241_i32_100 dim 1 : vector<8x256xf32>, i32 -> vector<8x256xf32>
    %c6_101 = arith.constant 6 : index
    %c0_102 = arith.constant 0 : index
    %c0_103 = arith.constant 0 : index
    %146 = vector.load %arg6[%c6_101, %c0_102, %c0_103] : memref<9x1x256xf32, #tpu.memory_space<vmem>>, vector<1x1x256xf32>
    %147 = vector.shape_cast %146 : vector<1x1x256xf32> to vector<1x256xf32>
    %148 = vector.broadcast %147 : vector<1x256xf32> to vector<8x256xf32>
    %149 = arith.mulf %145, %148 : vector<8x256xf32>
    %c6_104 = arith.constant 6 : index
    %c0_105 = arith.constant 0 : index
    %c0_106 = arith.constant 0 : index
    %150 = vector.load %arg4[%c6_104, %c0_105, %c0_106] : memref<9x8x8xbf16, #tpu.memory_space<vmem>>, vector<1x8x8xbf16>
    %151 = vector.shape_cast %150 : vector<1x8x8xbf16> to vector<8x8xbf16>
    %152 = arith.truncf %149 : vector<8x256xf32> to vector<8x256xbf16>
    %cst_107 = arith.constant dense<0.000000e+00> : vector<8x256xf32>
    %153 = tpu.matmul %151, %152, %cst_107 {dimension_numbers = #tpu.dot_dimension_numbers<[1], [0], [0], [1], [0, 0, 1, 1], [], []>} : vector<8x8xbf16>, vector<8x256xbf16>, vector<8x256xf32> -> vector<8x256xf32>
    %154 = arith.addf %144, %153 : vector<8x256xf32>
    %c240_i32_108 = arith.constant 240 : i32
    %155 = tpu.dynamic_rotate %90 by %c240_i32_108 dim 1 : vector<8x256xf32>, i32 -> vector<8x256xf32>
    %c7_109 = arith.constant 7 : index
    %c0_110 = arith.constant 0 : index
    %c0_111 = arith.constant 0 : index
    %156 = vector.load %arg6[%c7_109, %c0_110, %c0_111] : memref<9x1x256xf32, #tpu.memory_space<vmem>>, vector<1x1x256xf32>
    %157 = vector.shape_cast %156 : vector<1x1x256xf32> to vector<1x256xf32>
    %158 = vector.broadcast %157 : vector<1x256xf32> to vector<8x256xf32>
    %159 = arith.mulf %155, %158 : vector<8x256xf32>
    %c7_112 = arith.constant 7 : index
    %c0_113 = arith.constant 0 : index
    %c0_114 = arith.constant 0 : index
    %160 = vector.load %arg4[%c7_112, %c0_113, %c0_114] : memref<9x8x8xbf16, #tpu.memory_space<vmem>>, vector<1x8x8xbf16>
    %161 = vector.shape_cast %160 : vector<1x8x8xbf16> to vector<8x8xbf16>
    %162 = arith.truncf %159 : vector<8x256xf32> to vector<8x256xbf16>
    %cst_115 = arith.constant dense<0.000000e+00> : vector<8x256xf32>
    %163 = tpu.matmul %161, %162, %cst_115 {dimension_numbers = #tpu.dot_dimension_numbers<[1], [0], [0], [1], [0, 0, 1, 1], [], []>} : vector<8x8xbf16>, vector<8x256xbf16>, vector<8x256xf32> -> vector<8x256xf32>
    %164 = arith.addf %154, %163 : vector<8x256xf32>
    %c239_i32_116 = arith.constant 239 : i32
    %165 = tpu.dynamic_rotate %90 by %c239_i32_116 dim 1 : vector<8x256xf32>, i32 -> vector<8x256xf32>
    %c8_117 = arith.constant 8 : index
    %c0_118 = arith.constant 0 : index
    %c0_119 = arith.constant 0 : index
    %166 = vector.load %arg6[%c8_117, %c0_118, %c0_119] : memref<9x1x256xf32, #tpu.memory_space<vmem>>, vector<1x1x256xf32>
    %167 = vector.shape_cast %166 : vector<1x1x256xf32> to vector<1x256xf32>
    %168 = vector.broadcast %167 : vector<1x256xf32> to vector<8x256xf32>
    %169 = arith.mulf %165, %168 : vector<8x256xf32>
    %c8_120 = arith.constant 8 : index
    %c0_121 = arith.constant 0 : index
    %c0_122 = arith.constant 0 : index
    %170 = vector.load %arg4[%c8_120, %c0_121, %c0_122] : memref<9x8x8xbf16, #tpu.memory_space<vmem>>, vector<1x8x8xbf16>
    %171 = vector.shape_cast %170 : vector<1x8x8xbf16> to vector<8x8xbf16>
    %172 = arith.truncf %169 : vector<8x256xf32> to vector<8x256xbf16>
    %cst_123 = arith.constant dense<0.000000e+00> : vector<8x256xf32>
    %173 = tpu.matmul %171, %172, %cst_123 {dimension_numbers = #tpu.dot_dimension_numbers<[1], [0], [0], [1], [0, 0, 1, 1], [], []>} : vector<8x8xbf16>, vector<8x256xbf16>, vector<8x256xf32> -> vector<8x256xf32>
    %174 = arith.addf %164, %173 : vector<8x256xf32>
    %c0_124 = arith.constant 0 : index
    %c0_125 = arith.constant 0 : index
    %175 = vector.load %arg5[%c0_124, %c0_125] : memref<8x1xf32, #tpu.memory_space<vmem>>, vector<8x1xf32>
    %176 = vector.broadcast %175 : vector<8x1xf32> to vector<8x256xf32>
    %177 = arith.addf %174, %176 : vector<8x256xf32>
    %cst_126 = arith.constant 0.000000e+00 : f32
    %178 = vector.broadcast %cst_126 : f32 to vector<8x256xf32>
    %179 = arith.maximumf %177, %178 : vector<8x256xf32>
    %c0_127 = arith.constant 0 : index
    %c0_128 = arith.constant 0 : index
    %c0_129 = arith.constant 0 : index
    %180 = vector.load %arg7[%c0_127, %c0_128, %c0_129] : memref<1x8x256xf32, #tpu.memory_space<vmem>>, vector<1x8x256xf32>
    %181 = vector.shape_cast %180 : vector<1x8x256xf32> to vector<8x256xf32>
    %182 = vector.shape_cast %179 : vector<8x256xf32> to vector<1x8x256xf32>
    tpu.vector_store %arg7[%c0_127, %c0_128, %c0_129], %182 {strides = array<i32>} : memref<1x8x256xf32, #tpu.memory_space<vmem>>, vector<1x8x256xf32>,
    %183 = tpu.transpose %179, [1, 0] : vector<8x256xf32> -> vector<256x8xf32>
    %184 = vector.shape_cast %183 : vector<256x8xf32> to vector<16x16x8xf32>
    %185 = vector.shape_cast %184 : vector<16x16x8xf32> to vector<16x8x2x8xf32>
    %186 = vector.extract_strided_slice %185 {offsets = [0, 0, 0, 0], sizes = [16, 8, 1, 8], strides = [1, 1, 1, 1]} : vector<16x8x2x8xf32> to vector<16x8x1x8xf32>
    %187 = vector.shape_cast %186 : vector<16x8x1x8xf32> to vector<16x8x8xf32>
    %188 = vector.extract_strided_slice %185 {offsets = [0, 0, 1, 0], sizes = [16, 8, 1, 8], strides = [1, 1, 1, 1]} : vector<16x8x2x8xf32> to vector<16x8x1x8xf32>
    %189 = vector.shape_cast %188 : vector<16x8x1x8xf32> to vector<16x8x8xf32>
    %190 = arith.maximumf %187, %189 : vector<16x8x8xf32>
    %191 = vector.shape_cast %190 : vector<16x8x8xf32> to vector<8x2x8x8xf32>
    %192 = vector.extract_strided_slice %191 {offsets = [0, 0, 0, 0], sizes = [8, 1, 8, 8], strides = [1, 1, 1, 1]} : vector<8x2x8x8xf32> to vector<8x1x8x8xf32>
    %193 = vector.shape_cast %192 : vector<8x1x8x8xf32> to vector<8x8x8xf32>
    %194 = vector.extract_strided_slice %191 {offsets = [0, 1, 0, 0], sizes = [8, 1, 8, 8], strides = [1, 1, 1, 1]} : vector<8x2x8x8xf32> to vector<8x1x8x8xf32>
    %195 = vector.shape_cast %194 : vector<8x1x8x8xf32> to vector<8x8x8xf32>
    %196 = arith.maximumf %193, %195 : vector<8x8x8xf32>
    %197 = vector.shape_cast %196 : vector<8x8x8xf32> to vector<64x8xf32>
    %198 = tpu.transpose %197, [1, 0] : vector<64x8xf32> -> vector<8x64xf32>
    %c0_130 = arith.constant 0 : index
    %c0_131 = arith.constant 0 : index
    %c0_132 = arith.constant 0 : index
    %199 = vector.load %arg8[%c0_130, %c0_131, %c0_132] : memref<1x8x64xf32, #tpu.memory_space<vmem>>, vector<1x8x64xf32>
    %200 = vector.shape_cast %199 : vector<1x8x64xf32> to vector<8x64xf32>
    %201 = vector.shape_cast %198 : vector<8x64xf32> to vector<1x8x64xf32>
    tpu.vector_store %arg8[%c0_130, %c0_131, %c0_132], %201 {strides = array<i32>} : memref<1x8x64xf32, #tpu.memory_space<vmem>>, vector<1x8x64xf32>,
    return
  }
  func.func @transform_0(%arg0: i32) -> (i32, i32, i32) {
    %c0_i32 = arith.constant 0 : i32
    %c0_i32_0 = arith.constant 0 : i32
    %c0_i32_1 = arith.constant 0 : i32
    return %arg0, %c0_i32, %c0_i32_0 : i32, i32, i32
  }
  func.func @transform_1(%arg0: i32) -> (i32, i32, i32) {
    %c0_i32 = arith.constant 0 : i32
    %c0_i32_0 = arith.constant 0 : i32
    %c0_i32_1 = arith.constant 0 : i32
    %c0_i32_2 = arith.constant 0 : i32
    return %c0_i32, %c0_i32_0, %c0_i32_1 : i32, i32, i32
  }
  func.func @transform_2(%arg0: i32) -> (i32, i32) {
    %c0_i32 = arith.constant 0 : i32
    %c0_i32_0 = arith.constant 0 : i32
    %c0_i32_1 = arith.constant 0 : i32
    return %c0_i32, %c0_i32_0 : i32, i32
  }
  func.func @transform_3(%arg0: i32) -> (i32, i32, i32) {
    %c0_i32 = arith.constant 0 : i32
    %c0_i32_0 = arith.constant 0 : i32
    %c0_i32_1 = arith.constant 0 : i32
    %c0_i32_2 = arith.constant 0 : i32
    return %c0_i32, %c0_i32_0, %c0_i32_1 : i32, i32, i32
  }
  func.func @transform_4(%arg0: i32) -> (i32, i32) {
    %c0_i32 = arith.constant 0 : i32
    %c0_i32_0 = arith.constant 0 : i32
    %c0_i32_1 = arith.constant 0 : i32
    return %c0_i32, %c0_i32_0 : i32, i32
  }
  func.func @transform_5(%arg0: i32) -> (i32, i32, i32) {
    %c0_i32 = arith.constant 0 : i32
    %c0_i32_0 = arith.constant 0 : i32
    %c0_i32_1 = arith.constant 0 : i32
    %c0_i32_2 = arith.constant 0 : i32
    return %c0_i32, %c0_i32_0, %c0_i32_1 : i32, i32, i32
  }
  func.func @transform_6(%arg0: i32) -> (i32, i32, i32) {
    %c0_i32 = arith.constant 0 : i32
    %c0_i32_0 = arith.constant 0 : i32
    %c0_i32_1 = arith.constant 0 : i32
    return %arg0, %c0_i32, %c0_i32_0 : i32, i32, i32
  }
  func.func @transform_7(%arg0: i32) -> (i32, i32, i32) {
    %c0_i32 = arith.constant 0 : i32
    %c0_i32_0 = arith.constant 0 : i32
    %c0_i32_1 = arith.constant 0 : i32
    return %arg0, %c0_i32, %c0_i32_0 : i32, i32, i32
  }
}

</mosaic_0001>

<bundles_post_ra>
// kernel: conv2relu_conv2relu_down.1
= control target key start
LH: loop header
LB: loop body
LE: loop exit
PB: predicated region body
PF: predicated region fallthrough
CT: control target
= control target key end

     0   :  { %s3695_s24 = smov 0   ;;  %s4659_s0 = inlined_call_operand.vmem [shape: f32[2,4,256], index: 0, kind: input, shape index: {}]   ;;  %s4660_s1 = inlined_call_operand.vmem [shape: bf16[9,8,4], index: 1, kind: input, shape index: {}]   ;;  %s4661_s2 = inlined_call_operand.vmem [shape: f32[8,1], index: 2, kind: input, shape index: {}]   ;;  %s4662_s3 = inlined_call_operand.vmem [shape: bf16[9,8,8], index: 3, kind: input, shape index: {}]   ;;  %s4663_s4 = inlined_call_operand.vmem [shape: f32[8,1], index: 4, kind: input, shape index: {}]   ;;  %s4664_s5 = inlined_call_operand.vmem [shape: f32[9,1,256], index: 5, kind: input, shape index: {}]   ;;  %s4665_s6 = inlined_call_operand.vmem [shape: f32[2,8,256], index: 6, kind: output, shape index: {0}]   ;;  %s4666_s7 = inlined_call_operand.vmem [shape: f32[2,8,64], index: 7, kind: output, shape index: {1}]  }
   0x1 LB: > { %s3415_s25 = sadd.s32 4294967295, %s3643_s24   ;;  %p3419_p0 = scmp.ge.s32.totalorder %s3643_s24, 1  ;;  %s3643_s24 = sphi %s3695_s24, %s18_s24  }
   0x2   : > { %p240_p1 = scmp.lt.s32.totalorder %s3643_s24, 3 }
   0x4   : > { %p241_p2 = pnand %p3419_p0, %p240_p1 }
   0x6   : > { %244 = sbr.rel (%p241_p2) target bundleno = 1117 (0x45d), region = 44 }
   0xb   : > { %p276_p3 = scmp.lt.s32.totalorder %s3415_s25, 1  ;;  %v3645_v1 = vmov 0   ;;  %s3646_s30 = smov 17   ;;  %v973_v3 = vld [vmem:[%s4661_s2] sm:$0xff]  ;;  %v299_v4 = vlaneseq  ;;  %vm351_vm3 = vcmask 1041408   ;;  %vm347_vm5 = vcmask 31744  }
   0xc   : > { %390 = vmatprep.mubr.bf16.mxu0 %v3645_v1  ;;  %s3647_s8 = smov 16   ;;  %440 = vmatprep.mubr.bf16.mxu1 %v3645_v1  ;;  %s3648_s9 = smov 15   ;;  %v304_v9 = vld [vmem:[%s4664_s5] sm:$0x3]  ;;  %v3425_v10 = vld [vmem:[%s4664_s5 + $0x2] sm:$0x3] }
   0xd   : > { %s4697_s25 = smov (!%p276_p3, %s3415_s25), 1  ;;  %3635 = vset.pattern.permute.xlu0 %v3645_v1  ;;  %s3649_s10 = smov 1   ;;  %v3755_v5 = vshrl.u32 %v299_v4, 7  ;;  %v3757_v6 = vand.u32 127, %v299_v4  ;;  %v3431_v13 = vld [vmem:[%s4664_s5 + $0x4] sm:$0x3] }
   0xe   : > { %s3614_s26 = sshll.u32 %s4697_s25, 3  ;;  %s3650_s11 = smov 127   ;;  %v3435_v30 = vld [vmem:[%s4664_s5 + $0x6] sm:$0x3]  ;;  %v3442_v45 = vld [vmem:[%s4664_s5 + $0xa] sm:$0x3] }
   0xf   : > { %s280_s29 = scalar_lea.vmem %s4659_s0, %s3614_s26  ;;  %s3651_s12 = smov 113   ;;  %v3760_v7 = vsub.s32 0, %v3755_v5  ;;  %v3763_v8 = vsub.s32 1, %v3755_v5  ;;  %vm301_vm0 = vcmp.lt.s32.totalorder %v3757_v6, 17  ;;  %vm325_vm1 = vcmp.lt.s32.totalorder %v3757_v6, 16 }
  0x10   : > { %v3711_v0 = vld [vmem:[%s280_s29] sm:$0xff]  ;;  %s3652_s13 = smov 112   ;;  %s3653_s14 = smov 111   ;;  %vm453_vm2 = vcmp.lt.s32.totalorder %v3757_v6, 15  ;;  %vm531_vm4 = vcmp.lt.s32.totalorder %v3757_v6, 1  ;;  %vm665_vm6 = vcmp.lt.s32.totalorder %v3757_v6, 127 }
  0x11   : > { %295 = vrot.lane.b32.xlu1 %v3711_v0, %s3646_s30  ;;  %321 = vrot.lane.b32.xlu0 %v3711_v0, %s3647_s8  ;;  %v3720_v2 = vcombine.high %v3711_v0, %v3711_v0  ;;  %v3777_v14 = vrot.slane %v304_v9, %v3760_v7  ;;  %v3780_v15 = vrot.slane %v3425_v10, %v3760_v7  ;;  %v3426_v46 = vld [vmem:[%s4660_s1 + $0x4] sm:$0xf]  ;;  %v318_v47 = vld [vmem:[%s4660_s1] sm:$0xf]  ;;  %vm743_vm7 = vcmp.lt.s32.totalorder %v3757_v6, 113 }
  0x12   : > { %v3783_v16 = vrot.slane %v3425_v10, %v3763_v8  ;;  %v3786_v17 = vrot.slane %v304_v9, %v3763_v8  ;;  %v3790_v20 = vrot.slane %v3431_v13, %v3760_v7  ;;  %v3793_v21 = vrot.slane %v3431_v13, %v3763_v8  ;;  %v3446_v60 = vld [vmem:[%s4664_s5 + $0xc] sm:$0x3] }
  0x13   : > { %v3816_v39 = vrot.slane %v3435_v30, %v3760_v7  ;;  %v3819_v40 = vrot.slane %v3435_v30, %v3763_v8  ;;  %v3842_v54 = vrot.slane %v3442_v45, %v3760_v7  ;;  %v608_v55 = vpack.c.bf16 %v3720_v2, %v3720_v2 }
  0x14   : > { %v3852_v59 = vrot.slane %v3442_v45, %v3763_v8  ;;  %v3868_v10 = vrot.slane %v3446_v60, %v3760_v7  ;;  %v3876_v13 = vrot.slane %v3446_v60, %v3763_v8  ;;  %vm821_vm8 = vcmp.lt.s32.totalorder %v3757_v6, 112 }
  0x15   : > { %297 = vrot.lane.b32.xlu1 %v3720_v2, %s3646_s30  ;;  %323 = vrot.lane.b32.xlu0 %v3720_v2, %s3647_s8  ;;  %vm899_vm9 = vcmp.lt.s32.totalorder %v3757_v6, 111  ;;  %vm1010_vm10 = vcmask 1043456   ;;  %vm1006_vm11 = vcmask 64512   ;;  %vm3224_vm12 = vcmask 1041409  }
  0x16   : > { %vm3226_vm13 = vcmask 1042434   ;;  %vm3228_vm14 = vcmask 1043459   ;;  %vm3230_vm15 = vcmask 1044484  }
  0x19   : > { %451 = vrot.lane.b32.xlu1 %v3720_v2, %s3648_s9  ;;  %449 = vrot.lane.b32.xlu0 %v3711_v0, %s3648_s9 }
  0x1d   : > { %529 = vrot.lane.b32.xlu1 %v3720_v2, %s3649_s10  ;;  %527 = vrot.lane.b32.xlu0 %v3711_v0, %s3649_s10 }
  0x21   : > { %663 = vrot.lane.b32.xlu1 %v3720_v2, %s3650_s11  ;;  %661 = vrot.lane.b32.xlu0 %v3711_v0, %s3650_s11 }
  0x25   : > { %741 = vrot.lane.b32.xlu1 %v3720_v2, %s3651_s12  ;;  %739 = vrot.lane.b32.xlu0 %v3711_v0, %s3651_s12 }
  0x29   : > { %819 = vrot.lane.b32.xlu1 %v3720_v2, %s3652_s13  ;;  %817 = vrot.lane.b32.xlu0 %v3711_v0, %s3652_s13 }
  0x2d   : > { %897 = vrot.lane.b32.xlu1 %v3720_v2, %s3653_s14  ;;  %895 = vrot.lane.b32.xlu0 %v3711_v0, %s3653_s14 }
  0x31   : > { %976 = vperm.xlu0 %3635, %v973_v3   ;;  %v607_v3 = vpack.c.bf16 %v3711_v0, %v3711_v0 }
  0x83   : > { %v296_v11 = vpop.permute.xlu1 %295  ;;  %v322_v12 = vpop.permute.xlu0 %321 }
  0x87   : > { %v298_v18 = vpop.permute.xlu1 %297  ;;  %v324_v19 = vpop.permute.xlu0 %323 }
  0x88   : > { %v302_v22 = vsel %vm301_vm0, %v296_v11, %v298_v18  ;;  %v303_v23 = vsel %vm301_vm0, %v298_v18, %v296_v11  ;;  %v326_v24 = vsel %vm325_vm1, %v322_v12, %v324_v19  ;;  %v327_v25 = vsel %vm325_vm1, %v324_v19, %v322_v12  ;;  %v3450_v18 = vld [vmem:[%s4664_s5 + $0xe] sm:$0x3]  ;;  %v3432_v19 = vld [vmem:[%s4660_s1 + $0x8] sm:$0xf] }
  0x89   : > { %v316_v26 = vmul.f32 %v3777_v14, %v303_v23  ;;  %v341_v27 = vmul.f32 %v3780_v15, %v327_v25  ;;  %v342_v28 = vmul.f32 %v3783_v16, %v326_v24  ;;  %v317_v29 = vmul.f32 %v3786_v17, %v302_v22  ;;  %v3436_v22 = vld [vmem:[%s4660_s1 + $0xc] sm:$0xf] }
  0x8a   : > { %v3894_v30 = vrot.slane %v3450_v18, %v3760_v7 }
  0x8b   : > { %v452_v31 = vpop.permute.xlu1 %451  ;;  %v450_v32 = vpop.permute.xlu0 %449  ;;  %v346_v33 = vpack.c.bf16 %v342_v28, %v342_v28  ;;  %v320_v34 = vpack.c.bf16 %v317_v29, %v317_v29  ;;  %v345_v35 = vpack.c.bf16 %v341_v27, %v341_v27  ;;  %v319_v36 = vpack.c.bf16 %v316_v26, %v316_v26 }
  0x8c   : > { %v454_v37 = vsel %vm453_vm2, %v450_v32, %v452_v31  ;;  %v455_v38 = vsel %vm453_vm2, %v452_v31, %v450_v32  ;;  %v613_v27 = vsel %vm351_vm3, %v607_v3, 0 }
  0x8d   : > { %v469_v41 = vmul.f32 %v3790_v20, %v455_v38  ;;  %v470_v42 = vmul.f32 %v3793_v21, %v454_v37  ;;  %3427 = vmatprep.subr.msk.bf16.mxu0 %vm351_vm3, %v346_v33  ;;  %3429 = vmatprep.subr.msk.bf16.mxu1 %vm351_vm3, %v320_v34  ;;  %v353_v43 = vsel %vm351_vm3, %v345_v35, 0  ;;  %v403_v44 = vsel %vm351_vm3, %v319_v36, 0  ;;  %v3454_v35 = vld [vmem:[%s4664_s5 + $0x10] sm:$0x3] }
  0x8e   : > { %373 = vmatpush1.bf16.msra.mxu0 %v353_v43  ;;  %423 = vmatpush1.bf16.msra.mxu1 %v403_v44  ;;  %v3902_v34 = vrot.slane %v3450_v18, %v3763_v8 }
  0x8f   : > { %v473_v48 = vpack.c.bf16 %v469_v41, %v469_v41  ;;  %v474_v49 = vpack.c.bf16 %v470_v42, %v470_v42  ;;  %v530_v50 = vpop.permute.xlu1 %529  ;;  %v528_v51 = vpop.permute.xlu0 %527 }
  0x90   : > { %v532_v52 = vsel %vm531_vm4, %v528_v51, %v530_v50  ;;  %v533_v53 = vsel %vm531_vm4, %v530_v50, %v528_v51 }
  0x91   : > { %v547_v56 = vmul.f32 %v3816_v39, %v533_v53  ;;  %v548_v57 = vmul.f32 %v3819_v40, %v532_v52  ;;  %3428 = vmatmul.mubr.msk.bf16.vlgmr.msra.gmra.mxu0 %vm347_vm5, %v3426_v46  ;;  %3430 = vmatmul.mubr.msk.bf16.vlgmr.msra.gmra.mxu1 %vm347_vm5, %v318_v47  ;;  %v479_v58 = vsel %vm351_vm3, %v473_v48, 0  ;;  %v3919_v46 = vrot.slane %v3454_v35, %v3760_v7  ;;  %v3439_v48 = vld [vmem:[%s4660_s1 + $0x10] sm:$0xf] }
  0x92   : > { %3433 = vmatprep.subr.msk.bf16.mxu0 %vm351_vm3, %v474_v49  ;;  %516 = vmatprep.mubr.bf16.mxu0 %v3645_v1  ;;  %v3922_v47 = vrot.slane %v3454_v35, %v3763_v8  ;;  %v3443_v49 = vld [vmem:[%s4660_s1 + $0x14] sm:$0xf] }
  0x93   : > { %v551_v61 = vpack.c.bf16 %v547_v56, %v547_v56  ;;  %v552_v62 = vpack.c.bf16 %v548_v57, %v548_v57  ;;  %499 = vmatpush1.bf16.msra.mxu0 %v479_v58  ;;  %v664_v63 = vpop.permute.xlu1 %663  ;;  %v662_v2 = vpop.permute.xlu0 %661  ;;  %594 = vmatprep.mubr.bf16.mxu1 %v3645_v1 }
  0x94   : > { %v666_v4 = vsel %vm665_vm6, %v662_v2, %v664_v63  ;;  %v667_v9 = vsel %vm665_vm6, %v664_v63, %v662_v2  ;;  %3440 = vmatprep.subr.msk.bf16.mxu0 %vm351_vm3, %v608_v55  ;;  %v3447_v63 = vld [vmem:[%s4660_s1 + $0x18] sm:$0xf]  ;;  %v3451_v2 = vld [vmem:[%s4660_s1 + $0x1c] sm:$0xf] }
  0x95   : > { %3437 = vmatprep.subr.msk.bf16.mxu1 %vm351_vm3, %v552_v62  ;;  %v557_v11 = vsel %vm351_vm3, %v551_v61, 0  ;;  %v681_v12 = vmul.f32 %v3842_v54, %v666_v4  ;;  %v682_v0 = vmul.f32 %v3852_v59, %v667_v9  ;;  %v3455_v4 = vld [vmem:[%s4660_s1 + $0x20] sm:$0xf] }
  0x96   : > { %577 = vmatpush1.bf16.msra.mxu1 %v557_v11 }
  0x97   : > { %v685_v23 = vpack.c.bf16 %v681_v12, %v681_v12  ;;  %v686_v24 = vpack.c.bf16 %v682_v0, %v682_v0  ;;  %v742_v25 = vpop.permute.xlu1 %741  ;;  %v740_v26 = vpop.permute.xlu0 %739 }
  0x98   : > { %v744_v28 = vsel %vm743_vm7, %v740_v26, %v742_v25  ;;  %v745_v29 = vsel %vm743_vm7, %v742_v25, %v740_v26 }
  0x99   : > { %3434 = vmatmul.mubr.msk.bf16.vlgmr.msra.gmra.mxu0 %vm347_vm5, %v3432_v19  ;;  %3438 = vmatmul.mubr.msk.bf16.vlgmr.msra.gmra.mxu1 %vm347_vm5, %v3436_v22  ;;  %v759_v31 = vmul.f32 %v3868_v10, %v744_v28  ;;  %v760_v32 = vmul.f32 %v3876_v13, %v745_v29  ;;  %v691_v33 = vsel %vm351_vm3, %v685_v23, 0 }
  0x9a   : > { %3444 = vmatprep.subr.msk.bf16.mxu1 %vm351_vm3, %v686_v24  ;;  %633 = vmatpush1.bf16.msra.mxu0 %v613_v27 }
  0x9b   : > { %v763_v36 = vpack.c.bf16 %v759_v31, %v759_v31  ;;  %v764_v37 = vpack.c.bf16 %v760_v32, %v760_v32  ;;  %711 = vmatpush1.bf16.msra.mxu1 %v691_v33  ;;  %v820_v38 = vpop.permute.xlu1 %819  ;;  %v818_v41 = vpop.permute.xlu0 %817  ;;  %650 = vmatprep.mubr.bf16.mxu0 %v3645_v1 }
  0x9c   : > { %v822_v42 = vsel %vm821_vm8, %v818_v41, %v820_v38  ;;  %v823_v43 = vsel %vm821_vm8, %v820_v38, %v818_v41  ;;  %728 = vmatprep.mubr.bf16.mxu1 %v3645_v1 }
  0x9d   : > { %v837_v44 = vmul.f32 %v3894_v30, %v822_v42  ;;  %v838_v45 = vmul.f32 %v3902_v34, %v823_v43  ;;  %3448 = vmatprep.subr.msk.bf16.mxu0 %vm351_vm3, %v764_v37  ;;  %v769_v52 = vsel %vm351_vm3, %v763_v36, 0 }
  0x9f   : > { %v841_v50 = vpack.c.bf16 %v837_v44, %v837_v44  ;;  %v842_v51 = vpack.c.bf16 %v838_v45, %v838_v45  ;;  %v898_v53 = vpop.permute.xlu1 %897  ;;  %v896_v55 = vpop.permute.xlu0 %895 }
  0xa0   : > { %v900_v56 = vsel %vm899_vm9, %v896_v55, %v898_v53  ;;  %v901_v8 = vsel %vm899_vm9, %v898_v53, %v896_v55 }
  0xa1   : > { %3441 = vmatmul.mubr.msk.bf16.vlgmr.msra.gmra.mxu0 %vm347_vm5, %v3439_v48  ;;  %3445 = vmatmul.mubr.msk.bf16.vlgmr.msra.gmra.mxu1 %vm347_vm5, %v3443_v49  ;;  %v847_v57 = vsel %vm351_vm3, %v841_v50, 0  ;;  %v915_v58 = vmul.f32 %v3919_v46, %v900_v56  ;;  %v916_v60 = vmul.f32 %v3922_v47, %v901_v8 }
  0xa2   : > { %3452 = vmatprep.subr.msk.bf16.mxu1 %vm351_vm3, %v842_v51  ;;  %789 = vmatpush1.bf16.msra.mxu0 %v769_v52 }
  0xa3   : > { %867 = vmatpush1.bf16.msra.mxu1 %v847_v57  ;;  %v919_v61 = vpack.c.bf16 %v915_v58, %v915_v58  ;;  %v920_v62 = vpack.c.bf16 %v916_v60, %v916_v60  ;;  %806 = vmatprep.mubr.bf16.mxu0 %v3645_v1 }
  0xa4   : > { %884 = vmatprep.mubr.bf16.mxu1 %v3645_v1 }
  0xa5   : > { %3456 = vmatprep.subr.msk.bf16.mxu0 %vm351_vm3, %v920_v62  ;;  %v925_v3 = vsel %vm351_vm3, %v919_v61, 0  ;;  %vm3327_vm3 = vcmask 523264  }
  0xa9   : > { %3449 = vmatmul.mubr.msk.bf16.vlgmr.msra.gmra.mxu0 %vm347_vm5, %v3447_v63  ;;  %3453 = vmatmul.mubr.msk.bf16.vlgmr.msra.gmra.mxu1 %vm347_vm5, %v3451_v2 }
  0xaa   : > { %945 = vmatpush1.bf16.msra.mxu0 %v925_v3  ;;  %962 = vmatprep.mubr.bf16.mxu0 %v3645_v1 }
  0xab   : > { %1049 = vmatprep.mubr.bf16.mxu1 %v3645_v1 }
  0xb1   : > { %3457 = vmatmul.mubr.msk.bf16.vlgmr.msra.gmra.mxu0 %vm347_vm5, %v3455_v4 }
  0xb2   : > { %1099 = vmatprep.mubr.bf16.mxu0 %v3645_v1 }
 0x151   : > { %v392_v9 = vpop.f32.mrf.mxu0  ;;  %v442_v11 = vpop.f32.mrf.mxu1 }
 0x152   : > { %v443_v31 = vadd.f32 %v442_v11, %v392_v9 }
 0x153   : > { %v394_v12 = vpop.f32.mrf.mxu0  ;;  %v444_v0 = vpop.f32.mrf.mxu1 }
 0x154   : > { %v445_v35 = vadd.f32 %v444_v0, %v394_v12  ;;  %v977_v12 = vpop.permute.xlu0 %976 }
 0x155   : > { %v396_v18 = vpop.f32.mrf.mxu0  ;;  %v446_v19 = vpop.f32.mrf.mxu1 }
 0x157   : > { %v397_v22 = vpop.f32.mrf.mxu0  ;;  %v447_v23 = vpop.f32.mrf.mxu1 }
 0x159   : > { %v518_v24 = vpop.f32.mrf.mxu0  ;;  %v596_v25 = vpop.f32.mrf.mxu1 }
 0x15a   : > { %v525_v36 = vadd.f32 %v518_v24, %v443_v31 }
 0x15b   : > { %v520_v26 = vpop.f32.mrf.mxu0  ;;  %v598_v27 = vpop.f32.mrf.mxu1 }
 0x15c   : > { %v526_v41 = vadd.f32 %v520_v26, %v445_v35  ;;  %v603_v44 = vadd.f32 %v596_v25, %v525_v36 }
 0x15d   : > { %v522_v28 = vpop.f32.mrf.mxu0  ;;  %v600_v29 = vpop.f32.mrf.mxu1 }
 0x15e   : > { %v604_v49 = vadd.f32 %v598_v27, %v526_v41  ;;  %v1548_v29 = vld [vmem:[%s4663_s4] sm:$0xff] }
 0x15f   : > { %v523_v32 = vpop.f32.mrf.mxu0  ;;  %v601_v33 = vpop.f32.mrf.mxu1 }
 0x161   : > { %v652_v37 = vpop.f32.mrf.mxu0  ;;  %v730_v38 = vpop.f32.mrf.mxu1 }
 0x162   : > { %v659_v50 = vadd.f32 %v652_v37, %v603_v44 }
 0x163   : > { %v654_v42 = vpop.f32.mrf.mxu0  ;;  %v732_v43 = vpop.f32.mrf.mxu1 }
 0x164   : > { %v660_v53 = vadd.f32 %v654_v42, %v604_v49  ;;  %v737_v8 = vadd.f32 %v730_v38, %v659_v50 }
 0x165   : > { %v656_v45 = vpop.f32.mrf.mxu0  ;;  %v734_v48 = vpop.f32.mrf.mxu1 }
 0x166   : > { %v738_v60 = vadd.f32 %v732_v43, %v660_v53 }
 0x167   : > { %v657_v51 = vpop.f32.mrf.mxu0  ;;  %v735_v52 = vpop.f32.mrf.mxu1 }
 0x169   : > { %v808_v55 = vpop.f32.mrf.mxu0  ;;  %v886_v56 = vpop.f32.mrf.mxu1 }
 0x16a   : > { %v815_v61 = vadd.f32 %v808_v55, %v737_v8 }
 0x16b   : > { %v810_v57 = vpop.f32.mrf.mxu0  ;;  %v888_v58 = vpop.f32.mrf.mxu1 }
 0x16c   : > { %v816_v2 = vadd.f32 %v810_v57, %v738_v60  ;;  %v893_v9 = vadd.f32 %v886_v56, %v815_v61  ;;  %v991_v60 = vld [vmem:[%s4662_s3] sm:$0xf] }
 0x16d   : > { %v812_v62 = vpop.f32.mrf.mxu0  ;;  %v890_v63 = vpop.f32.mrf.mxu1 }
 0x16e   : > { %v894_v0 = vadd.f32 %v888_v58, %v816_v2 }
 0x16f   : > { %v813_v3 = vpop.f32.mrf.mxu0  ;;  %v891_v4 = vpop.f32.mrf.mxu1 }
 0x171   : > { %v964_v11 = vpop.f32.mrf.mxu0 }
 0x172   : > { %v971_v18 = vadd.f32 %v964_v11, %v893_v9 }
 0x173   : > { %v966_v19 = vpop.f32.mrf.mxu0 }
 0x174   : > { %v979_v22 = vadd.f32 %v977_v12, %v971_v18  ;;  %v972_v23 = vadd.f32 %v966_v19, %v894_v0 }
 0x175   : > { %v968_v24 = vpop.f32.mrf.mxu0 }
 0x176   : > { %v3960_v25 = vmax.f32 %v979_v22, 0.0  ;;  %v980_v26 = vadd.f32 %v977_v12, %v972_v23  ;;  %v3463_v12 = vld [vmem:[%s4662_s3 + $0x8] sm:$0xf] }
 0x177   : > { %v969_v27 = vpop.f32.mrf.mxu0 }
 0x178   : > { %983 = vrot.lane.b32.xlu0 %v3960_v25, %s3646_s30  ;;  %994 = vrot.lane.b32.xlu1 %v3960_v25, %s3647_s8  ;;  %v3966_v28 = vmax.f32 %v980_v26, 0.0  ;;  %v1238_v2 = vpack.c.bf16 %v3960_v25, %v3960_v25  ;;  %v3466_v27 = vld [vmem:[%s4662_s3 + $0xc] sm:$0xf] }
 0x17a   : > { %v1239_v11 = vpack.c.bf16 %v3966_v28, %v3966_v28  ;;  %v1244_v26 = vsel %vm1010_vm10, %v1238_v2, 0 }
 0x17c   : > { %1108 = vrot.lane.b32.xlu0 %v3960_v25, %s3648_s9  ;;  %996 = vrot.lane.b32.xlu1 %v3966_v28, %s3647_s8 }
 0x180   : > { %1172 = vrot.lane.b32.xlu0 %v3960_v25, %s3649_s10  ;;  %985 = vrot.lane.b32.xlu1 %v3966_v28, %s3646_s30  ;;  %s3615_s30 = sshll.u32 %s4697_s25, 4 }
 0x184   : > { %1292 = vrot.lane.b32.xlu0 %v3960_v25, %s3650_s11  ;;  %1110 = vrot.lane.b32.xlu1 %v3966_v28, %s3648_s9 }
 0x188   : > { %1356 = vrot.lane.b32.xlu0 %v3960_v25, %s3651_s12  ;;  %1174 = vrot.lane.b32.xlu1 %v3966_v28, %s3649_s10  ;;  %s285_s10 = scalar_lea.vmem %s4665_s6, %s3615_s30 }
 0x18c   : > { %1420 = vrot.lane.b32.xlu0 %v3960_v25, %s3652_s13  ;;  %1294 = vrot.lane.b32.xlu1 %v3966_v28, %s3650_s11 }
 0x190   : > { %1484 = vrot.lane.b32.xlu0 %v3960_v25, %s3653_s14  ;;  %1358 = vrot.lane.b32.xlu1 %v3966_v28, %s3651_s12 }
 0x194   : > { %1551 = vperm.xlu0 %3635, %v1548_v29   ;;  %1422 = vrot.lane.b32.xlu1 %v3966_v28, %s3652_s13  ;;  %s289_s13 = scalar_lea.vmem %s4666_s7, %s3614_s26 }
 0x198   : > { %1486 = vrot.lane.b32.xlu1 %v3966_v28, %s3653_s14 }
 0x1ea   : > { %v984_v31 = vpop.permute.xlu0 %983  ;;  %v995_v32 = vpop.permute.xlu1 %994 }
 0x1ee   : > { %v1109_v33 = vpop.permute.xlu0 %1108  ;;  %v997_v35 = vpop.permute.xlu1 %996 }
 0x1ef   : > { %v998_v36 = vsel %vm325_vm1, %v995_v32, %v997_v35  ;;  %v999_v37 = vsel %vm325_vm1, %v997_v35, %v995_v32  ;;  %vm3234_vm1 = vcmask 1046534  }
 0x1f0   : > { %v1000_v38 = vmul.f32 %v999_v37, %v3780_v15  ;;  %v1001_v41 = vmul.f32 %v998_v36, %v3783_v16  ;;  %v3458_v16 = vld [vmem:[%s4662_s3 + $0x4] sm:$0xf]  ;;  %v3469_v37 = vld [vmem:[%s4662_s3 + $0x10] sm:$0xf] }
 0x1f2   : > { %v1004_v42 = vpack.c.bf16 %v1000_v38, %v1000_v38  ;;  %v1005_v43 = vpack.c.bf16 %v1001_v41, %v1001_v41  ;;  %v1173_v44 = vpop.permute.xlu0 %1172  ;;  %v986_v45 = vpop.permute.xlu1 %985 }
 0x1f3   : > { %v987_v48 = vsel %vm301_vm0, %v984_v31, %v986_v45  ;;  %v988_v49 = vsel %vm301_vm0, %v986_v45, %v984_v31  ;;  %vm3232_vm0 = vcmask 1045509  }
 0x1f4   : > { %v989_v50 = vmul.f32 %v988_v49, %v3777_v14  ;;  %v990_v51 = vmul.f32 %v987_v48, %v3786_v17  ;;  %3459 = vmatprep.subr.msk.bf16.mxu1 %vm1010_vm10, %v1005_v43  ;;  %v1012_v15 = vsel %vm1010_vm10, %v1004_v42, 0  ;;  %v3472_v48 = vld [vmem:[%s4662_s3 + $0x14] sm:$0xf] }
 0x1f5   : > { %1032 = vmatpush1.bf16.msra.mxu1 %v1012_v15 }
 0x1f6   : > { %v992_v52 = vpack.c.bf16 %v989_v50, %v989_v50  ;;  %v993_v53 = vpack.c.bf16 %v990_v51, %v990_v51  ;;  %v1111_v55 = vpop.permute.xlu1 %1110  ;;  %v1293_v17 = vpop.permute.xlu0 %1292 }
 0x1f7   : > { %v1112_v56 = vsel %vm453_vm2, %v1109_v33, %v1111_v55  ;;  %v1113_v14 = vsel %vm453_vm2, %v1111_v55, %v1109_v33  ;;  %v3475_v55 = vld [vmem:[%s4662_s3 + $0x18] sm:$0xf]  ;;  %vm3236_vm2 = vcmask 1047559  }
 0x1f8   : > { %v1114_v8 = vmul.f32 %v1113_v14, %v3790_v20  ;;  %v1115_v57 = vmul.f32 %v1112_v56, %v3793_v21  ;;  %3460 = vmatmul.mubr.msk.bf16.vlgmr.msra.gmra.mxu1 %vm1006_vm11, %v3458_v16  ;;  %3461 = vmatprep.subr.msk.bf16.mxu0 %vm1010_vm10, %v993_v53  ;;  %v1062_v58 = vsel %vm1010_vm10, %v992_v52, 0  ;;  %v3481_v14 = vld [vmem:[%s4662_s3 + $0x20] sm:$0xf] }
 0x1f9   : > { %1082 = vmatpush1.bf16.msra.mxu0 %v1062_v58  ;;  %1161 = vmatprep.mubr.bf16.mxu1 %v3645_v1 }
 0x1fa   : > { %v1118_v61 = vpack.c.bf16 %v1114_v8, %v1114_v8  ;;  %v1119_v62 = vpack.c.bf16 %v1115_v57, %v1115_v57  ;;  %v1175_v63 = vpop.permute.xlu1 %1174  ;;  %v1357_v0 = vpop.permute.xlu0 %1356 }
 0x1fb   : > { %v1176_v20 = vsel %vm531_vm4, %v1173_v44, %v1175_v63  ;;  %v1177_v21 = vsel %vm531_vm4, %v1175_v63, %v1173_v44 }
 0x1fc   : > { %v1178_v3 = vmul.f32 %v1177_v21, %v3816_v39  ;;  %v1179_v4 = vmul.f32 %v1176_v20, %v3819_v40  ;;  %3462 = vmatmul.mubr.msk.bf16.vlgmr.msra.gmra.mxu0 %vm1006_vm11, %v991_v60  ;;  %3464 = vmatprep.subr.msk.bf16.mxu1 %vm1010_vm10, %v1119_v62  ;;  %v1124_v9 = vsel %vm1010_vm10, %v1118_v61, 0 }
 0x1fd   : > { %1144 = vmatpush1.bf16.msra.mxu1 %v1124_v9  ;;  %1225 = vmatprep.mubr.bf16.mxu0 %v3645_v1 }
 0x1fe   : > { %v1182_v39 = vpack.c.bf16 %v1178_v3, %v1178_v3  ;;  %v1183_v18 = vpack.c.bf16 %v1179_v4, %v1179_v4  ;;  %v1295_v40 = vpop.permute.xlu1 %1294  ;;  %3470 = vmatprep.subr.msk.bf16.mxu1 %vm1010_vm10, %v1239_v11  ;;  %v1421_v32 = vpop.permute.xlu0 %1420 }
 0x1ff   : > { %v1296_v19 = vsel %vm665_vm6, %v1293_v17, %v1295_v40  ;;  %v1297_v22 = vsel %vm665_vm6, %v1295_v40, %v1293_v17 }
 0x200   : > { %v1298_v23 = vmul.f32 %v1296_v19, %v3842_v54  ;;  %v1299_v24 = vmul.f32 %v1297_v22, %v3852_v59  ;;  %3465 = vmatmul.mubr.msk.bf16.vlgmr.msra.gmra.mxu1 %vm1006_vm11, %v3463_v12  ;;  %3467 = vmatprep.subr.msk.bf16.mxu0 %vm1010_vm10, %v1183_v18  ;;  %v1188_v25 = vsel %vm1010_vm10, %v1182_v39, 0 }
 0x201   : > { %1208 = vmatpush1.bf16.msra.mxu0 %v1188_v25  ;;  %1264 = vmatpush1.bf16.msra.mxu1 %v1244_v26 }
 0x202   : > { %v1302_v28 = vpack.c.bf16 %v1298_v23, %v1298_v23  ;;  %v1303_v29 = vpack.c.bf16 %v1299_v24, %v1299_v24  ;;  %v1359_v31 = vpop.permute.xlu1 %1358  ;;  %1281 = vmatprep.mubr.bf16.mxu1 %v3645_v1  ;;  %v1485_v49 = vpop.permute.xlu0 %1484 }
 0x203   : > { %v1360_v54 = vsel %vm743_vm7, %v1357_v0, %v1359_v31  ;;  %v1361_v59 = vsel %vm743_vm7, %v1359_v31, %v1357_v0 }
 0x204   : > { %v1362_v33 = vmul.f32 %v1360_v54, %v3868_v10  ;;  %v1363_v35 = vmul.f32 %v1361_v59, %v3876_v13  ;;  %3468 = vmatmul.mubr.msk.bf16.vlgmr.msra.gmra.mxu0 %vm1006_vm11, %v3466_v27  ;;  %3473 = vmatprep.subr.msk.bf16.mxu0 %vm1010_vm10, %v1303_v29  ;;  %v1308_v36 = vsel %vm1010_vm10, %v1302_v28, 0 }
 0x205   : > { %1328 = vmatpush1.bf16.msra.mxu0 %v1308_v36  ;;  %1345 = vmatprep.mubr.bf16.mxu0 %v3645_v1 }
 0x206   : > { %v1366_v38 = vpack.c.bf16 %v1362_v33, %v1362_v33  ;;  %v1367_v41 = vpack.c.bf16 %v1363_v35, %v1363_v35  ;;  %v1423_v42 = vpop.permute.xlu1 %1422 }
 0x207   : > { %v1424_v10 = vsel %vm821_vm8, %v1421_v32, %v1423_v42  ;;  %v1425_v13 = vsel %vm821_vm8, %v1423_v42, %v1421_v32 }
 0x208   : > { %v1426_v43 = vmul.f32 %v1424_v10, %v3894_v30  ;;  %v1427_v44 = vmul.f32 %v1425_v13, %v3902_v34  ;;  %3471 = vmatmul.mubr.msk.bf16.vlgmr.msra.gmra.mxu1 %vm1006_vm11, %v3469_v37  ;;  %3476 = vmatprep.subr.msk.bf16.mxu1 %vm1010_vm10, %v1367_v41  ;;  %v1372_v45 = vsel %vm1010_vm10, %v1366_v38, 0 }
 0x209   : > { %1392 = vmatpush1.bf16.msra.mxu1 %v1372_v45  ;;  %1409 = vmatprep.mubr.bf16.mxu1 %v3645_v1 }
 0x20a   : > { %v1430_v50 = vpack.c.bf16 %v1426_v43, %v1426_v43  ;;  %v1431_v51 = vpack.c.bf16 %v1427_v44, %v1427_v44  ;;  %v1487_v15 = vpop.permute.xlu1 %1486 }
 0x20b   : > { %v1488_v30 = vsel %vm899_vm9, %v1485_v49, %v1487_v15  ;;  %v1489_v34 = vsel %vm899_vm9, %v1487_v15, %v1485_v49 }
 0x20c   : > { %v1490_v16 = vmul.f32 %v1488_v30, %v3919_v46  ;;  %v1491_v52 = vmul.f32 %v1489_v34, %v3922_v47  ;;  %3474 = vmatmul.mubr.msk.bf16.vlgmr.msra.gmra.mxu0 %vm1006_vm11, %v3472_v48  ;;  %3479 = vmatprep.subr.msk.bf16.mxu0 %vm1010_vm10, %v1431_v51  ;;  %v1436_v53 = vsel %vm1010_vm10, %v1430_v50, 0  ;;  %v3478_v47 = vld [vmem:[%s4662_s3 + $0x1c] sm:$0xf] }
 0x20d   : > { %1456 = vmatpush1.bf16.msra.mxu0 %v1436_v53  ;;  %1473 = vmatprep.mubr.bf16.mxu0 %v3645_v1 }
 0x20e   : > { %v1494_v56 = vpack.c.bf16 %v1490_v16, %v1490_v16  ;;  %v1495_v6 = vpack.c.bf16 %v1491_v52, %v1491_v52 }
 0x20f   : > { %v1552_v45 = vpop.permute.xlu0 %1551 }
 0x210   : > { %3477 = vmatmul.mubr.msk.bf16.vlgmr.msra.gmra.mxu1 %vm1006_vm11, %v3475_v55  ;;  %3482 = vmatprep.subr.msk.bf16.mxu1 %vm1010_vm10, %v1495_v6  ;;  %v1500_v46 = vsel %vm1010_vm10, %v1494_v56, 0  ;;  %v3654_v56 = vmov 1983009808  }
 0x211   : > { %1520 = vmatpush1.bf16.msra.mxu1 %v1500_v46  ;;  %1537 = vmatprep.mubr.bf16.mxu1 %v3645_v1  ;;  %v1658_v6 = vunpack.c.l.s4 %v3654_v56 }
 0x213   : > { %v1659_v46 = vunpack.c.0.s8 %v1658_v6 }
 0x214   : > { %3480 = vmatmul.mubr.msk.bf16.vlgmr.msra.gmra.mxu0 %vm1006_vm11, %v3478_v47 }
 0x215   : > { %v4117_v47 = vsub.s32 %v1659_v46, %v3755_v5 }
 0x218   : > { %3483 = vmatmul.mubr.msk.bf16.vlgmr.msra.gmra.mxu1 %vm1006_vm11, %v3481_v14 }
 0x2b8   : > { %v1051_v17 = vpop.f32.mrf.mxu1 }
 0x2ba   : > { %v1053_v8 = vpop.f32.mrf.mxu1 }
 0x2bc   : > { %v1055_v57 = vpop.f32.mrf.mxu1  ;;  %v1101_v58 = vpop.f32.mrf.mxu0 }
 0x2bd   : > { %v1102_v39 = vadd.f32 %v1101_v58, %v1051_v17 }
 0x2be   : > { %v1056_v60 = vpop.f32.mrf.mxu1  ;;  %v1103_v61 = vpop.f32.mrf.mxu0 }
 0x2bf   : > { %v1104_v19 = vadd.f32 %v1103_v61, %v1053_v8 }
 0x2c0   : > { %v1105_v62 = vpop.f32.mrf.mxu0  ;;  %v1163_v63 = vpop.f32.mrf.mxu1 }
 0x2c1   : > { %v1170_v22 = vadd.f32 %v1163_v63, %v1102_v39 }
 0x2c2   : > { %v1106_v20 = vpop.f32.mrf.mxu0  ;;  %v1165_v21 = vpop.f32.mrf.mxu1 }
 0x2c3   : > { %v1171_v25 = vadd.f32 %v1165_v21, %v1104_v19 }
 0x2c4   : > { %v1167_v2 = vpop.f32.mrf.mxu1  ;;  %v1227_v1 = vpop.f32.mrf.mxu0 }
 0x2c5   : > { %v1234_v26 = vadd.f32 %v1227_v1, %v1170_v22 }
 0x2c6   : > { %v1168_v3 = vpop.f32.mrf.mxu1  ;;  %v1229_v4 = vpop.f32.mrf.mxu0 }
 0x2c7   : > { %v1235_v29 = vadd.f32 %v1229_v4, %v1171_v25 }
 0x2c8   : > { %v1231_v9 = vpop.f32.mrf.mxu0  ;;  %v1283_v11 = vpop.f32.mrf.mxu1 }
 0x2c9   : > { %v1290_v31 = vadd.f32 %v1283_v11, %v1234_v26 }
 0x2ca   : > { %v1232_v12 = vpop.f32.mrf.mxu0  ;;  %v1285_v0 = vpop.f32.mrf.mxu1 }
 0x2cb   : > { %v1291_v32 = vadd.f32 %v1285_v0, %v1235_v29 }
 0x2cc   : > { %v1287_v18 = vpop.f32.mrf.mxu1  ;;  %v1347_v40 = vpop.f32.mrf.mxu0 }
 0x2cd   : > { %v1354_v33 = vadd.f32 %v1347_v40, %v1290_v31 }
 0x2ce   : > { %v1288_v23 = vpop.f32.mrf.mxu1  ;;  %v1349_v24 = vpop.f32.mrf.mxu0 }
 0x2cf   : > { %v1355_v37 = vadd.f32 %v1349_v24, %v1291_v32 }
 0x2d0   : > { %v1351_v27 = vpop.f32.mrf.mxu0  ;;  %v1411_v28 = vpop.f32.mrf.mxu1 }
 0x2d1   : > { %v1418_v38 = vadd.f32 %v1411_v28, %v1354_v33 }
 0x2d2   : > { %v1352_v54 = vpop.f32.mrf.mxu0  ;;  %v1413_v59 = vpop.f32.mrf.mxu1 }
 0x2d3   : > { %v1419_v10 = vadd.f32 %v1413_v59, %v1355_v37 }
 0x2d4   : > { %v1415_v35 = vpop.f32.mrf.mxu1  ;;  %v1475_v36 = vpop.f32.mrf.mxu0 }
 0x2d5   : > { %v1482_v13 = vadd.f32 %v1475_v36, %v1418_v38 }
 0x2d6   : > { %v1416_v41 = vpop.f32.mrf.mxu1  ;;  %v1477_v42 = vpop.f32.mrf.mxu0 }
 0x2d7   : > { %v1483_v48 = vadd.f32 %v1477_v42, %v1419_v10 }
 0x2d8   : > { %v1539_v43 = vpop.f32.mrf.mxu1  ;;  %v1479_v44 = vpop.f32.mrf.mxu0 }
 0x2d9   : > { %v1546_v49 = vadd.f32 %v1539_v43, %v1482_v13 }
 0x2da   : > { %v1541_v50 = vpop.f32.mrf.mxu1  ;;  %v1480_v51 = vpop.f32.mrf.mxu0 }
 0x2db   : > { %v1547_v15 = vadd.f32 %v1541_v50, %v1483_v48  ;;  %v1554_v30 = vadd.f32 %v1552_v45, %v1546_v49 }
 0x2dc   : > { %v1543_v34 = vpop.f32.mrf.mxu1 }
 0x2dd   : > { %v1555_v16 = vadd.f32 %v1552_v45, %v1547_v15  ;;  %v1556_v52 = vmax.f32 %v1554_v30, 0.0 }
 0x2de   : > { %v1544_v53 = vpop.f32.mrf.mxu1 }
 0x2df   : > { %v1557_v55 = vmax.f32 %v1555_v16, 0.0  ;;  %1560 = vxpose.xlu1.b32.start.end [1/1] (short) %v1556_v52, 128  ;;  %1558 = vst [vmem:[%s285_s10] sm:$0xff] %v1556_v52 }
 0x2e1   : > { %1559 = vst [vmem:[%s285_s10 + $0x8] sm:$0xff] %v1557_v55  ;;  %1592 = vxpose.xlu0.b32.start.end [1/1] (short) %v1557_v55, 128 }
 0x35b   : > { %v1576_v14 = vpop.trf.xlu1 }
 0x35c   : > { %v1656_v17 = vcombine.high %v1576_v14, %v1576_v14  ;;  %v1663_v8 = vrot.slane %v1576_v14, %v4117_v47 }
 0x35d   : > { %v1608_v60 = vpop.trf.xlu0 }
 0x35e   : > { %v1670_v57 = vrot.slane %v1656_v17, %v4117_v47  ;;  %v1671_v58 = vcombine.high %v1663_v8, %v1663_v8  ;;  %v1928_v62 = vcombine.high %v1608_v60, %v1608_v60  ;;  %v4122_v63 = vrot.slane %v1608_v60, %v4117_v47 }
 0x35f   : > { %v1577_v61 = vpop.trf.xlu1  ;;  %v3484_v21 = vrot.slane %v1663_v8, 9 }
 0x360   : > { %v1672_v20 = vcombine.high %v1670_v57, %v1670_v57  ;;  %v3485_v2 = vrot.slane %v1671_v58, 9  ;;  %v3486_v1 = vrot.slane %v1670_v57, 9  ;;  %v1673_v3 = vcombine.high %v1577_v61, %v1577_v61 }
 0x361   : > { %v1680_v5 = vrot.slane %v1577_v61, %v4117_v47  ;;  %v1942_v12 = vrot.slane %v1928_v62, %v4117_v47  ;;  %v1943_v0 = vcombine.high %v4122_v63, %v4122_v63  ;;  %v2712_v39 = vmax.f32 %v1663_v8, %v3484_v21  ;;  %v1609_v48 = vpop.trf.xlu0 }
 0x362   : > { %v3487_v4 = vrot.slane %v1672_v20, 9  ;;  %v1687_v9 = vrot.slane %v1673_v3, %v4117_v47  ;;  %v2713_v19 = vmax.f32 %v1671_v58, %v3485_v2  ;;  %v2714_v22 = vmax.f32 %v1670_v57, %v3486_v1 }
 0x363   : > { %v1578_v11 = vpop.trf.xlu1  ;;  %v1688_v23 = vcombine.high %v1680_v5, %v1680_v5  ;;  %v3488_v24 = vrot.slane %v1680_v5, 9  ;;  %v1944_v31 = vcombine.high %v1942_v12, %v1942_v12  ;;  %v3548_v54 = vrot.slane %v4122_v63, 9 }
 0x364   : > { %v1690_v18 = vcombine.high %v1578_v11, %v1578_v11  ;;  %v1697_v40 = vrot.slane %v1578_v11, %v4117_v47  ;;  %v4130_v25 = vcombine.high %v1687_v9, %v1687_v9  ;;  %v2715_v29 = vmax.f32 %v1672_v20, %v3487_v4 }
 0x365   : > { %v3549_v59 = vrot.slane %v1943_v0, 9  ;;  %v3489_v38 = vrot.slane %v1688_v23, 9  ;;  %v3490_v41 = vrot.slane %v1687_v9, 9  ;;  %v4134_v42 = vmax.f32 %v1680_v5, %v3488_v24 }
 0x366   : > { %v1704_v26 = vrot.slane %v1690_v18, %v4117_v47  ;;  %v1705_v27 = vcombine.high %v1697_v40, %v1697_v40  ;;  %v3492_v28 = vrot.slane %v1697_v40, 9  ;;  %v3550_v10 = vrot.slane %v1942_v12, 9 }
 0x367   : > { %v1579_v32 = vpop.trf.xlu1  ;;  %v3491_v13 = vrot.slane %v4130_v25, 9  ;;  %v3551_v49 = vrot.slane %v1944_v31, 9  ;;  %v1945_v15 = vcombine.high %v1609_v48, %v1609_v48  ;;  %v1952_v52 = vrot.slane %v1609_v48, %v4117_v47 }
 0x368   : > { %v1706_v33 = vcombine.high %v1704_v26, %v1704_v26  ;;  %v3493_v35 = vrot.slane %v1705_v27, 9  ;;  %v3494_v36 = vrot.slane %v1704_v26, 9  ;;  %v2720_v37 = vmax.f32 %v1697_v40, %v3492_v28 }
 0x369   : > { %v1707_v50 = vcombine.high %v1579_v32, %v1579_v32  ;;  %v1714_v51 = vrot.slane %v1579_v32, %v4117_v47  ;;  %v4140_v14 = vmax.f32 %v1688_v23, %v3489_v38  ;;  %v4142_v17 = vmax.f32 %v1687_v9, %v3490_v41 }
 0x36a   : > { %v3495_v43 = vrot.slane %v1706_v33, 9  ;;  %v2721_v44 = vmax.f32 %v1705_v27, %v3493_v35  ;;  %v2722_v45 = vmax.f32 %v1704_v26, %v3494_v36  ;;  %v2840_v34 = vmax.f32 %v2712_v39, %v2720_v37 }
 0x36b   : > { %v1580_v53 = vpop.trf.xlu1  ;;  %v1721_v56 = vrot.slane %v1707_v50, %v4117_v47  ;;  %v1722_v6 = vcombine.high %v1714_v51, %v1714_v51  ;;  %v3496_v46 = vrot.slane %v1714_v51, 9  ;;  %v1959_v57 = vrot.slane %v1945_v15, %v4117_v47 }
 0x36c   : > { %v2723_v30 = vmax.f32 %v1706_v33, %v3495_v43  ;;  %v2841_v16 = vmax.f32 %v2713_v19, %v2721_v44  ;;  %v2842_v55 = vmax.f32 %v2714_v22, %v2722_v45  ;;  %v4149_v20 = vmax.f32 %v4122_v63, %v3548_v54 }
 0x36d   : > { %v4146_v60 = vcombine.high %v1721_v56, %v1721_v56  ;;  %v3497_v61 = vrot.slane %v1722_v6, 9  ;;  %v3498_v62 = vrot.slane %v1721_v56, 9  ;;  %v4151_v21 = vmax.f32 %v1943_v0, %v3549_v59  ;;  %v1610_v0 = vpop.trf.xlu0 }
 0x36e   : > { %v2843_v8 = vmax.f32 %v2715_v29, %v2723_v30  ;;  %v2975_v58 = vrot.slane %v2841_v16, %v3760_v7  ;;  %v2724_v2 = vmax.f32 %v1714_v51, %v3496_v46  ;;  %v1960_v1 = vcombine.high %v1952_v52, %v1952_v52 }
 0x36f   : > { %v2971_v3 = vrot.slane %v2840_v34, %v3760_v7  ;;  %v4155_v5 = vrot.slane %v2842_v55, %v3760_v7  ;;  %v4157_v4 = vmax.f32 %v1942_v12, %v3550_v10  ;;  %v4159_v9 = vmax.f32 %v1944_v31, %v3551_v49  ;;  %v1581_v40 = vpop.trf.xlu1 }
 0x370   : > { %v4162_v11 = vrot.slane %v2843_v8, %v3760_v7  ;;  %v4164_v39 = vmax.f32 %v1722_v6, %v3497_v61  ;;  %v1961_v63 = vcombine.high %v1959_v57, %v1959_v57  ;;  %v3552_v18 = vrot.slane %v1952_v52, 9 }
 0x371   : > { %v4167_v19 = vsel %vm3224_vm12, %v2975_v58, %v2971_v3  ;;  %v3499_v22 = vrot.slane %v4146_v60, 9  ;;  %v4170_v23 = vmax.f32 %v1721_v56, %v3498_v62  ;;  %v1724_v12 = vcombine.high %v1580_v53, %v1580_v53  ;;  %v1611_v15 = vpop.trf.xlu0 }
 0x372   : > { %v2844_v24 = vmax.f32 %v4134_v42, %v2724_v2  ;;  %v3553_v26 = vrot.slane %v1960_v1, 9  ;;  %v3554_v27 = vrot.slane %v1959_v57, 9  ;;  %v1731_v28 = vrot.slane %v1580_v53, %v4117_v47 }
 0x373   : > { %v1738_v29 = vrot.slane %v1724_v12, %v4117_v47  ;;  %v1962_v31 = vcombine.high %v1610_v0, %v1610_v0  ;;  %v1969_v54 = vrot.slane %v1610_v0, %v4117_v47  ;;  %v1741_v59 = vcombine.high %v1581_v40, %v1581_v40  ;;  %v1582_v0 = vpop.trf.xlu1 }
 0x374   : > { %v2845_v32 = vmax.f32 %v4140_v14, %v4164_v39  ;;  %v3555_v33 = vrot.slane %v1961_v63, 9  ;;  %v4178_v35 = vmax.f32 %v1952_v52, %v3552_v18  ;;  %v1739_v36 = vcombine.high %v1731_v28, %v1731_v28 }
 0x375   : > { %v1740_v37 = vcombine.high %v1738_v29, %v1738_v29  ;;  %v1976_v38 = vrot.slane %v1962_v31, %v4117_v47  ;;  %v1977_v41 = vcombine.high %v1969_v54, %v1969_v54  ;;  %v1748_v42 = vrot.slane %v1581_v40, %v4117_v47 }
 0x376   : > { %v2846_v10 = vmax.f32 %v4142_v17, %v4170_v23  ;;  %v4185_v43 = vrot.slane %v2844_v24, %v3760_v7  ;;  %v3556_v44 = vrot.slane %v1969_v54, 9  ;;  %v4188_v45 = vrot.slane %v1741_v59, %v4117_v47 }
 0x377   : > { %v3500_v48 = vrot.slane %v1731_v28, 9  ;;  %v3502_v49 = vrot.slane %v1738_v29, 9  ;;  %v1978_v50 = vcombine.high %v1976_v38, %v1976_v38  ;;  %v3557_v51 = vrot.slane %v1977_v41, 9 }
 0x378   : > { %v3501_v30 = vrot.slane %v1739_v36, 9  ;;  %v3503_v34 = vrot.slane %v1740_v37, 9  ;;  %v3558_v16 = vrot.slane %v1976_v38, 9  ;;  %v2784_v52 = vmax.f32 %v1969_v54, %v3556_v44 }
 0x379   : > { %v3559_v53 = vrot.slane %v1978_v50, 9  ;;  %v2785_v55 = vmax.f32 %v1977_v41, %v3557_v51  ;;  %v1756_v56 = vcombine.high %v1748_v42, %v1748_v42  ;;  %v1757_v6 = vcombine.high %v4188_v45, %v4188_v45 }
 0x37a   : > { %v4192_v46 = vmax.f32 %v1960_v1, %v3553_v26  ;;  %v4194_v8 = vmax.f32 %v1959_v57, %v3554_v27  ;;  %v4196_v58 = vmax.f32 %v1976_v38, %v3558_v16  ;;  %v1979_v61 = vcombine.high %v1611_v15, %v1611_v15 }
 0x37b   : > { %v4198_v62 = vmax.f32 %v1961_v63, %v3555_v33  ;;  %v2787_v2 = vmax.f32 %v1978_v50, %v3559_v53  ;;  %v2872_v3 = vmax.f32 %v4149_v20, %v2784_v52  ;;  %v3504_v18 = vrot.slane %v1748_v42, 9  ;;  %v1612_v50 = vpop.trf.xlu0 }
 0x37c   : > { %v4201_v40 = vmax.f32 %v1731_v28, %v3500_v48  ;;  %v4203_v12 = vmax.f32 %v1739_v36, %v3501_v30  ;;  %v4205_v24 = vmax.f32 %v1738_v29, %v3502_v49  ;;  %v4207_v1 = vmax.f32 %v1740_v37, %v3503_v34 }
 0x37d   : > { %v2873_v57 = vmax.f32 %v4151_v21, %v2785_v55  ;;  %v3505_v26 = vrot.slane %v1756_v56, 9  ;;  %v3506_v27 = vrot.slane %v4188_v45, 9  ;;  %v3507_v63 = vrot.slane %v1757_v6, 9 }
 0x37e   : > { %v2874_v31 = vmax.f32 %v4157_v4, %v4196_v58  ;;  %v1986_v20 = vrot.slane %v1611_v15, %v4117_v47  ;;  %v1993_v28 = vrot.slane %v1979_v61, %v4117_v47  ;;  %v1758_v54 = vcombine.high %v1582_v0, %v1582_v0 }
 0x37f   : > { %v2875_v59 = vmax.f32 %v4159_v9, %v2787_v2  ;;  %v3099_v29 = vrot.slane %v2872_v3, %v3760_v7  ;;  %v4217_v33 = vmax.f32 %v1748_v42, %v3504_v18  ;;  %v1765_v21 = vrot.slane %v1582_v0, %v4117_v47 }
 0x380   : > { %v1994_v36 = vcombine.high %v1986_v20, %v1986_v20  ;;  %v1995_v37 = vcombine.high %v1993_v28, %v1993_v28  ;;  %v3560_v38 = vrot.slane %v1986_v20, 9  ;;  %v3562_v41 = vrot.slane %v1993_v28, 9 }
 0x381   : > { %v3103_v44 = vrot.slane %v2873_v57, %v3760_v7  ;;  %v1772_v4 = vrot.slane %v1758_v54, %v4117_v47  ;;  %v1773_v48 = vcombine.high %v1765_v21, %v1765_v21  ;;  %v3508_v49 = vrot.slane %v1765_v21, 9 }
 0x382   : > { %v3561_v51 = vrot.slane %v1994_v36, 9  ;;  %v2788_v9 = vmax.f32 %v1986_v20, %v3560_v38  ;;  %v1996_v15 = vcombine.high %v1612_v50, %v1612_v50  ;;  %v4223_v42 = vrot.slane %v1612_v50, %v4117_v47 }
 0x383   : > { %v1774_v30 = vcombine.high %v1772_v4, %v1772_v4  ;;  %v3509_v34 = vrot.slane %v1773_v48, 9  ;;  %v3510_v16 = vrot.slane %v1772_v4, 9  ;;  %v2736_v52 = vmax.f32 %v1765_v21, %v3508_v49 }
 0x384   : > { %v3563_v53 = vrot.slane %v1995_v37, 9  ;;  %v2789_v55 = vmax.f32 %v1994_v36, %v3561_v51  ;;  %v4225_v58 = vmax.f32 %v1993_v28, %v3562_v41  ;;  %v2876_v61 = vmax.f32 %v4178_v35, %v2788_v9  ;;  %v1613_v51 = vpop.trf.xlu0 }
 0x385   : > { %v3511_v2 = vrot.slane %v1774_v30, 9  ;;  %v2737_v3 = vmax.f32 %v1773_v48, %v3509_v34  ;;  %v2738_v18 = vmax.f32 %v1772_v4, %v3510_v16  ;;  %v2848_v0 = vmax.f32 %v4201_v40, %v2736_v52 }
 0x386   : > { %v4229_v57 = vmax.f32 %v1756_v56, %v3505_v26  ;;  %v2877_v20 = vmax.f32 %v4192_v46, %v2789_v55  ;;  %v2010_v54 = vrot.slane %v1996_v15, %v4117_v47  ;;  %v2011_v21 = vcombine.high %v4223_v42, %v4223_v42 }
 0x387   : > { %v4236_v28 = vmax.f32 %v4188_v45, %v3506_v27  ;;  %v4238_v35 = vmax.f32 %v1757_v6, %v3507_v63  ;;  %v2739_v36 = vmax.f32 %v1774_v30, %v3511_v2  ;;  %v2849_v38 = vmax.f32 %v4203_v12, %v2737_v3  ;;  %v1583_v63 = vpop.trf.xlu1 }
 0x388   : > { %v4242_v40 = vrot.slane %v2874_v31, %v3760_v7  ;;  %v4245_v56 = vrot.slane %v2875_v59, %v3760_v7  ;;  %v4248_v46 = vsel %vm3224_vm12, %v3103_v44, %v3099_v29  ;;  %v4250_v26 = vmax.f32 %v1995_v37, %v3563_v53 }
 0x389   : > { %v4255_v6 = vrot.slane %v2876_v61, %v3760_v7  ;;  %v2850_v27 = vmax.f32 %v4205_v24, %v2738_v18  ;;  %v3003_v12 = vrot.slane %v2848_v0, %v3760_v7  ;;  %v4260_v31 = vrot.slane %v2877_v20, %v3760_v7 }
 0x38a   : > { %v2012_v59 = vcombine.high %v2010_v54, %v2010_v54  ;;  %v3564_v29 = vrot.slane %v4223_v42, 9  ;;  %v3565_v41 = vrot.slane %v2011_v21, 9  ;;  %v2851_v37 = vmax.f32 %v4207_v1, %v2739_v36 }
 0x38b   : > { %4669 = vst [vmem:[#allocation2_spill] sm:$0xff] %v4255_v6  ;;  %4670 = vst [vmem:[#allocation3_spill] sm:$0xff] %v4260_v31  ;;  %v3007_v44 = vrot.slane %v2849_v38, %v3760_v7  ;;  %v2719_v4 = vmax.f32 %v4130_v25, %v3491_v13  ;;  %v2727_v24 = vmax.f32 %v4146_v60, %v3499_v22  ;;  %v3566_v48 = vrot.slane %v2010_v54, 9 }
 0x38c   : > { %v2991_v49 = vrot.slane %v2845_v32, %v3760_v7  ;;  %v2995_v1 = vrot.slane %v2846_v10, %v3760_v7  ;;  %v3227_v50 = vsel %vm3226_vm13, %v4155_v5, %v4167_v19  ;;  %v1775_v60 = vcombine.high %v1583_v63, %v1583_v63  ;;  %v1584_v10 = vpop.trf.xlu1 }
 0x38d   : > { %v2847_v25 = vmax.f32 %v2719_v4, %v2727_v24  ;;  %v3229_v13 = vsel %vm3228_vm14, %v4162_v11, %v3227_v50  ;;  %v1782_v22 = vrot.slane %v1583_v63, %v4117_v47  ;;  %v3567_v9 = vrot.slane %v2012_v59, 9  ;;  %v1614_v24 = vpop.trf.xlu0 }
 0x38e   : > { %v3231_v14 = vsel %vm3230_vm15, %v4185_v43, %v3229_v13  ;;  %v2013_v39 = vcombine.high %v1613_v51, %v1613_v51  ;;  %v2020_v17 = vrot.slane %v1613_v51, %v4117_v47  ;;  %v1789_v5 = vrot.slane %v1775_v60, %v4117_v47 }
 0x38f   : > { %v2999_v23 = vrot.slane %v2847_v25, %v3760_v7  ;;  %v3233_v32 = vsel %vm3232_vm0, %v2991_v49, %v3231_v14  ;;  %v1790_v19 = vcombine.high %v1782_v22, %v1782_v22  ;;  %v3512_v15 = vrot.slane %v1782_v22, 9 }
 0x390   : > { %v3235_v11 = vsel %vm3234_vm1, %v2995_v1, %v3233_v32  ;;  %v2027_v30 = vrot.slane %v2013_v39, %v4117_v47  ;;  %v2028_v34 = vcombine.high %v2020_v17, %v2020_v17  ;;  %v1791_v43 = vcombine.high %v1789_v5, %v1789_v5 }
 0x391   : > { %v3237_v16 = vsel %vm3236_vm2, %v2999_v23, %v3235_v11  ;;  %v3513_v52 = vrot.slane %v1790_v19, 9  ;;  %v3514_v53 = vrot.slane %v1789_v5, 9  ;;  %v4295_v55 = vrot.slane %v2850_v27, %v3760_v7 }
 0x392   : > { %3295 = vxpose.xlu0.b32.start [1/8] (short) (narrow) %v3237_v16, 8  ;;  %v2740_v61 = vmax.f32 %v1782_v22, %v3512_v15  ;;  %v2029_v2 = vcombine.high %v2027_v30, %v2027_v30  ;;  %v1792_v3 = vcombine.high %v1584_v10, %v1584_v10  ;;  %v4298_v18 = vmax.f32 %v4223_v42, %v3564_v29 }
 0x393   : > { %v4300_v0 = vmax.f32 %v2011_v21, %v3565_v41  ;;  %v3568_v20 = vrot.slane %v2020_v17, 9  ;;  %v3569_v36 = vrot.slane %v2028_v34, 9  ;;  %v4303_v38 = vrot.slane %v2851_v37, %v3760_v7  ;;  %v1585_v21 = vpop.trf.xlu1 }
 0x394   : > { %v4306_v63 = vsel %vm3224_vm12, %v3007_v44, %v3003_v12  ;;  %v4308_v4 = vmax.f32 %v2010_v54, %v3566_v48  ;;  %v3515_v27 = vrot.slane %v1791_v43, 9  ;;  %v4310_v49 = vmax.f32 %v2012_v59, %v3567_v9 }
 0x395   : > { %v2741_v1 = vmax.f32 %v1790_v19, %v3513_v52  ;;  %v4312_v50 = vmax.f32 %v1789_v5, %v3514_v53  ;;  %v3570_v42 = vrot.slane %v2027_v30, 9  ;;  %v2852_v29 = vmax.f32 %v4217_v33, %v2740_v61 }
 0x396   : > { %v3571_v41 = vrot.slane %v2029_v2, 9  ;;  %v1799_v37 = vrot.slane %v1584_v10, %v4117_v47  ;;  %v1806_v25 = vrot.slane %v1792_v3, %v4117_v47  ;;  %v4317_v12 = vmax.f32 %v2020_v17, %v3568_v20 }
 0x397   : > { %v4319_v54 = vmax.f32 %v2028_v34, %v3569_v36  ;;  %v2030_v44 = vcombine.high %v1614_v24, %v1614_v24  ;;  %v2037_v59 = vrot.slane %v1614_v24, %v4117_v47  ;;  %v4322_v48 = vmax.f32 %v1791_v43, %v3515_v27  ;;  %v1615_v24 = vpop.trf.xlu0 }
 0x398   : > { %v1807_v13 = vcombine.high %v1799_v37, %v1799_v37  ;;  %v1808_v60 = vcombine.high %v1806_v25, %v1806_v25  ;;  %v1809_v22 = vcombine.high %v1585_v21, %v1585_v21  ;;  %v1816_v14 = vrot.slane %v1585_v21, %v4117_v47 }
 0x399   : > { %v2044_v51 = vrot.slane %v2030_v44, %v4117_v47  ;;  %v2045_v33 = vcombine.high %v2037_v59, %v2037_v59  ;;  %v3572_v9 = vrot.slane %v2037_v59, 9  ;;  %v2853_v39 = vmax.f32 %v4229_v57, %v2741_v1 }
 0x39a   : > { %v3516_v23 = vrot.slane %v1799_v37, 9  ;;  %v3518_v32 = vrot.slane %v1806_v25, 9  ;;  %v3517_v15 = vrot.slane %v1807_v13, 9  ;;  %v3519_v34 = vrot.slane %v1808_v60, 9 }
 0x39b   : > { %v2046_v5 = vcombine.high %v2044_v51, %v2044_v51  ;;  %v3573_v19 = vrot.slane %v2045_v33, 9  ;;  %v3574_v10 = vrot.slane %v2044_v51, 9  ;;  %v2800_v11 = vmax.f32 %v2037_v59, %v3572_v9 }
 0x39c   : > { %v1823_v16 = vrot.slane %v1809_v22, %v4117_v47  ;;  %v1824_v43 = vcombine.high %v1816_v14, %v1816_v14  ;;  %v4330_v52 = vmax.f32 %v2027_v30, %v3570_v42  ;;  %v4333_v57 = vrot.slane %v2852_v29, %v3760_v7  ;;  %v1586_v42 = vpop.trf.xlu1 }
 0x39d   : > { %v3575_v53 = vrot.slane %v2046_v5, 9  ;;  %v2801_v61 = vmax.f32 %v2045_v33, %v3573_v19  ;;  %v2802_v3 = vmax.f32 %v2044_v51, %v3574_v10  ;;  %v4336_v20 = vrot.slane %v2853_v39, %v3760_v7 }
 0x39e   : > { %4671 = vst [vmem:[#allocation4_spill] sm:$0xff] %v4330_v52  ;;  %v4338_v36 = vmax.f32 %v2029_v2, %v3571_v41  ;;  %v2880_v27 = vmax.f32 %v4298_v18, %v2800_v11  ;;  %v4341_v1 = vmax.f32 %v1799_v37, %v3516_v23  ;;  %v1825_v44 = vcombine.high %v1823_v16, %v1823_v16 }
 0x39f   : > { %v2803_v21 = vmax.f32 %v2046_v5, %v3575_v53  ;;  %v3520_v30 = vrot.slane %v1816_v14, 9  ;;  %v2745_v59 = vmax.f32 %v1807_v13, %v3517_v15  ;;  %v4343_v22 = vmax.f32 %v1806_v25, %v3518_v32 }
 0x3a0   : > { %4672 = vst [vmem:[#allocation5_spill] sm:$0xff] %v4338_v36  ;;  %v4345_v51 = vmax.f32 %v1808_v60, %v3519_v34  ;;  %v3521_v29 = vrot.slane %v1824_v43, 9  ;;  %v2881_v33 = vmax.f32 %v4300_v0, %v2801_v61  ;;  %v2882_v2 = vmax.f32 %v4308_v4, %v2802_v3 }
 0x3a1   : > { %v3522_v41 = vrot.slane %v1823_v16, 9  ;;  %v2047_v9 = vcombine.high %v1615_v24, %v1615_v24  ;;  %v3131_v18 = vrot.slane %v2880_v27, %v3760_v7  ;;  %v2054_v37 = vrot.slane %v1615_v24, %v4117_v47 }
 0x3a2   : > { %v1826_v39 = vcombine.high %v1586_v42, %v1586_v42  ;;  %v1833_v23 = vrot.slane %v1586_v42, %v4117_v47  ;;  %v2883_v13 = vmax.f32 %v4310_v49, %v2803_v21  ;;  %v3523_v25 = vrot.slane %v1825_v44, 9  ;;  %v1616_v49 = vpop.trf.xlu0 }
 0x3a3   : > { %v4353_v32 = vmax.f32 %v1816_v14, %v3520_v30  ;;  %v2061_v60 = vrot.slane %v2047_v9, %v4117_v47  ;;  %v2062_v5 = vcombine.high %v2054_v37, %v2054_v37  ;;  %v3576_v0 = vrot.slane %v2054_v37, 9 }
 0x3a4   : > { %v1840_v4 = vrot.slane %v1826_v39, %v4117_v47  ;;  %v1841_v19 = vcombine.high %v1833_v23, %v1833_v23  ;;  %v3135_v10 = vrot.slane %v2881_v33, %v3760_v7  ;;  %v3524_v34 = vrot.slane %v1833_v23, 9 }
 0x3a5   : > { %v2063_v11 = vcombine.high %v2061_v60, %v2061_v60  ;;  %v3578_v15 = vrot.slane %v2061_v60, 9  ;;  %v3577_v53 = vrot.slane %v2062_v5, 9  ;;  %v2804_v61 = vmax.f32 %v2054_v37, %v3576_v0 }
 0x3a6   : > { %v1842_v3 = vcombine.high %v1840_v4, %v1840_v4  ;;  %v3525_v27 = vrot.slane %v1841_v19, 9  ;;  %v3526_v24 = vrot.slane %v1840_v4, 9  ;;  %v2752_v14 = vmax.f32 %v1833_v23, %v3524_v34 }
 0x3a7   : > { %v2064_v21 = vcombine.high %v1616_v49, %v1616_v49  ;;  %v4359_v30 = vrot.slane %v1616_v49, %v4117_v47  ;;  %v3579_v42 = vrot.slane %v2063_v11, 9  ;;  %v2805_v9 = vmax.f32 %v2062_v5, %v3577_v53 }
 0x3a8   : > { %v3527_v39 = vrot.slane %v1842_v3, 9  ;;  %v2753_v45 = vmax.f32 %v1841_v19, %v3525_v27  ;;  %v4361_v17 = vmax.f32 %v2061_v60, %v3578_v15  ;;  %v2884_v33 = vmax.f32 %v4317_v12, %v2804_v61  ;;  %v1587_v12 = vpop.trf.xlu1  ;;  %v1617_v15 = vpop.trf.xlu0 }
 0x3a9   : > { %v2754_v36 = vmax.f32 %v1840_v4, %v3526_v24  ;;  %v2856_v37 = vmax.f32 %v4341_v1, %v2752_v14  ;;  %v4365_v0 = vmax.f32 %v1824_v43, %v3521_v29  ;;  %v2885_v31 = vmax.f32 %v4319_v54, %v2805_v9 }
 0x3aa   : > { %4673 = vst [vmem:[#allocation6_spill] sm:$0xff] %v4361_v17  ;;  %v2755_v23 = vmax.f32 %v1842_v3, %v3527_v39  ;;  %v2857_v34 = vmax.f32 %v2745_v59, %v2753_v45  ;;  %v4369_v49 = vrot.slane %v2882_v2, %v3760_v7  ;;  %v4371_v6 = vmax.f32 %v1823_v16, %v3522_v41 }
 0x3ab   : > { %v2078_v5 = vrot.slane %v2064_v21, %v4117_v47  ;;  %v2079_v60 = vcombine.high %v4359_v30, %v4359_v30  ;;  %v4377_v4 = vrot.slane %v2883_v13, %v3760_v7  ;;  %v4380_v43 = vsel %vm3224_vm12, %v3135_v10, %v3131_v18 }
 0x3ac   : > { %4674 = vst [vmem:[#allocation7_spill] sm:$0xff] %v4369_v49  ;;  %4676 = vst [vmem:[#allocation9_spill] sm:$0xff] %v4380_v43  ;;  %v4382_v54 = vmax.f32 %v1825_v44, %v3523_v25  ;;  %v4384_v45 = vmax.f32 %v2063_v11, %v3579_v42  ;;  %v4389_v1 = vrot.slane %v2884_v33, %v3760_v7  ;;  %v3580_v25 = vrot.slane %v4359_v30, 9  ;;  %v1588_v3 = vpop.trf.xlu1 }
 0x3ad   : > { %4675 = vst [vmem:[#allocation8_spill] sm:$0xff] %v4377_v4  ;;  %v2858_v59 = vmax.f32 %v4343_v22, %v2754_v36  ;;  %v3035_v29 = vrot.slane %v2856_v37, %v3760_v7  ;;  %v4394_v2 = vrot.slane %v2885_v31, %v3760_v7  ;;  %v2859_v41 = vmax.f32 %v4345_v51, %v2755_v23 }
 0x3ae   : > { %4677 = vst [vmem:[#allocation10_spill] sm:$0xff] %v4389_v1  ;;  %v3039_v44 = vrot.slane %v2857_v34, %v3760_v7  ;;  %v2855_v18 = vmax.f32 %v4238_v35, %v4322_v48  ;;  %v2080_v13 = vcombine.high %v2078_v5, %v2078_v5  ;;  %v3581_v19 = vrot.slane %v2079_v60, 9 }
 0x3af   : > { %4678 = vst [vmem:[#allocation11_spill] sm:$0xff] %v4394_v2  ;;  %v3582_v10 = vrot.slane %v2078_v5, 9  ;;  %v4679_v36 = vmax.f32 %v4236_v28, %v4312_v50  ;;  %v3239_v31 = vsel %vm3226_vm13, %v4295_v55, %v4306_v63  ;;  %v1843_v51 = vcombine.high %v1587_v12, %v1587_v12 }
 0x3b0   : > { %v1850_v11 = vrot.slane %v1587_v12, %v4117_v47  ;;  %v3031_v35 = vrot.slane %v2855_v18, %v3760_v7  ;;  %v3240_v48 = vsel %vm3228_vm14, %v4303_v38, %v3239_v31  ;;  %v2081_v53 = vcombine.high %v1617_v15, %v1617_v15 }
 0x3b1   : > { %v3027_v22 = vrot.slane %v4679_v36, %v3760_v7  ;;  %v2088_v61 = vrot.slane %v1617_v15, %v4117_v47  ;;  %v3241_v28 = vsel %vm3230_vm15, %v4333_v57, %v3240_v48  ;;  %v1857_v50 = vrot.slane %v1843_v51, %v4117_v47  ;;  %v1618_v51 = vpop.trf.xlu0 }
 0x3b2   : > { %v1858_v27 = vcombine.high %v1850_v11, %v1850_v11  ;;  %v3528_v55 = vrot.slane %v1850_v11, 9  ;;  %v3583_v63 = vrot.slane %v2080_v13, 9  ;;  %v3242_v24 = vsel %vm3232_vm0, %v4336_v20, %v3241_v28 }
 0x3b3   : > { %v2095_v14 = vrot.slane %v2081_v53, %v4117_v47  ;;  %v2096_v21 = vcombine.high %v2088_v61, %v2088_v61  ;;  %v3243_v38 = vsel %vm3234_vm1, %v3027_v22, %v3242_v24  ;;  %v1859_v42 = vcombine.high %v1857_v50, %v1857_v50 }
 0x3b4   : > { %v3529_v9 = vrot.slane %v1858_v27, 9  ;;  %v3530_v39 = vrot.slane %v1857_v50, 9  ;;  %v4421_v33 = vrot.slane %v2858_v59, %v3760_v7  ;;  %v3244_v57 = vsel %vm3236_vm2, %v3031_v35, %v3243_v38 }
 0x3b5   : > { %v2756_v37 = vmax.f32 %v1850_v11, %v3528_v55  ;;  %v2097_v23 = vcombine.high %v2095_v14, %v2095_v14  ;;  %v4425_v34 = vrot.slane %v2859_v41, %v3760_v7  ;;  %v4428_v20 = vsel %vm3224_vm12, %v3039_v44, %v3035_v29  ;;  %3296 = vxpose.xlu0.b32.cont [2/8] (short) (narrow) %v3244_v57, 8  ;;  %v1589_v11 = vpop.trf.xlu1 }
 0x3b6   : > { %v4431_v12 = vmax.f32 %v4359_v30, %v3580_v25  ;;  %v3584_v18 = vrot.slane %v2088_v61, 9  ;;  %v4433_v36 = vmax.f32 %v2079_v60, %v3581_v19  ;;  %v4435_v22 = vmax.f32 %v2078_v5, %v3582_v10 }
 0x3b7   : > { %v4437_v59 = vmax.f32 %v2080_v13, %v3583_v63  ;;  %v3585_v31 = vrot.slane %v2096_v21, 9  ;;  %v3531_v15 = vrot.slane %v1859_v42, 9  ;;  %v2757_v41 = vmax.f32 %v1858_v27, %v3529_v9 }
 0x3b8   : > { %v4439_v35 = vmax.f32 %v1857_v50, %v3530_v39  ;;  %v3586_v29 = vrot.slane %v2095_v14, 9  ;;  %v2860_v44 = vmax.f32 %v4353_v32, %v2756_v37  ;;  %v3587_v30 = vrot.slane %v2097_v23, 9 }
 0x3b9   : > { %v1860_v25 = vcombine.high %v1588_v3, %v1588_v3  ;;  %v1867_v48 = vrot.slane %v1588_v3, %v4117_v47  ;;  %v4443_v60 = vmax.f32 %v2088_v61, %v3584_v18  ;;  %v2098_v5 = vcombine.high %v1618_v51, %v1618_v51 }
 0x3ba   : > { %v2105_v13 = vrot.slane %v1618_v51, %v4117_v47  ;;  %v1877_v19 = vcombine.high %v1589_v11, %v1589_v11  ;;  %v4446_v10 = vmax.f32 %v2096_v21, %v3585_v31  ;;  %v1884_v50 = vrot.slane %v1589_v11, %v4117_v47 }
 0x3bb   : > { %v1874_v53 = vrot.slane %v1860_v25, %v4117_v47  ;;  %v1875_v28 = vcombine.high %v1867_v48, %v1867_v48  ;;  %v4450_v27 = vmax.f32 %v1859_v42, %v3531_v15  ;;  %v2112_v32 = vrot.slane %v2098_v5, %v4117_v47 }
 0x3bc   : > { %v2113_v55 = vcombine.high %v2105_v13, %v2105_v13  ;;  %v3588_v63 = vrot.slane %v2105_v13, 9  ;;  %v2861_v61 = vmax.f32 %v4365_v0, %v2757_v41  ;;  %v3532_v24 = vrot.slane %v1867_v48, 9 }
 0x3bd   : > { %v1876_v3 = vcombine.high %v1874_v53, %v1874_v53  ;;  %v4455_v38 = vrot.slane %v1877_v19, %v4117_v47  ;;  %v2114_v21 = vcombine.high %v2112_v32, %v2112_v32  ;;  %v3590_v39 = vrot.slane %v2112_v32, 9 }
 0x3be   : > { %v3589_v9 = vrot.slane %v2113_v55, 9  ;;  %v2816_v57 = vmax.f32 %v2105_v13, %v3588_v63  ;;  %v3533_v37 = vrot.slane %v1875_v28, 9  ;;  %v3534_v18 = vrot.slane %v1874_v53, 9  ;;  %v1619_v13 = vpop.trf.xlu0 }
 0x3bf   : > { %v3535_v31 = vrot.slane %v1876_v3, 9  ;;  %v1892_v42 = vcombine.high %v1884_v50, %v1884_v50  ;;  %v3591_v11 = vrot.slane %v2114_v21, 9  ;;  %v2818_v25 = vmax.f32 %v2112_v32, %v3590_v39  ;;  %v1590_v32 = vpop.trf.xlu1 }
 0x3c0   : > { %v2817_v15 = vmax.f32 %v2113_v55, %v3589_v9  ;;  %v4460_v0 = vrot.slane %v2860_v44, %v3760_v7  ;;  %v4462_v41 = vmax.f32 %v2095_v14, %v3586_v29  ;;  %v4464_v5 = vmax.f32 %v2097_v23, %v3587_v30 }
 0x3c1   : > { %v2888_v19 = vmax.f32 %v4431_v12, %v2816_v57  ;;  %v4468_v63 = vrot.slane %v2861_v61, %v3760_v7  ;;  %v4470_v16 = vmax.f32 %v1867_v48, %v3532_v24  ;;  %v1893_v51 = vcombine.high %v4455_v38, %v4455_v38 }
 0x3c2   : > { %4680 = vst [vmem:[#allocation12_spill] sm:$0xff] %v4464_v5  ;;  %v3536_v55 = vrot.slane %v1884_v50, 9  ;;  %v4474_v9 = vmax.f32 %v1875_v28, %v3533_v37  ;;  %v4476_v44 = vmax.f32 %v1874_v53, %v3534_v18  ;;  %v4478_v14 = vmax.f32 %v1876_v3, %v3535_v31 }
 0x3c3   : > { %v3537_v23 = vrot.slane %v1892_v42, 9  ;;  %v2819_v29 = vmax.f32 %v2114_v21, %v3591_v11  ;;  %v2889_v12 = vmax.f32 %v4433_v36, %v2817_v15  ;;  %v2890_v30 = vmax.f32 %v4435_v22, %v2818_v25 }
 0x3c4   : > { %v2115_v61 = vcombine.high %v1619_v13, %v1619_v13  ;;  %v3163_v48 = vrot.slane %v2888_v19, %v3760_v7  ;;  %v3538_v24 = vrot.slane %v4455_v38, 9  ;;  %v2122_v39 = vrot.slane %v1619_v13, %v4117_v47  ;;  %v1620_v19 = vpop.trf.xlu0 }
 0x3c5   : > { %v1894_v57 = vcombine.high %v1590_v32, %v1590_v32  ;;  %v3539_v28 = vrot.slane %v1893_v51, 9  ;;  %v4485_v37 = vmax.f32 %v1884_v50, %v3536_v55  ;;  %v1901_v3 = vrot.slane %v1590_v32, %v4117_v47 }
 0x3c6   : > { %v2129_v53 = vrot.slane %v2115_v61, %v4117_v47  ;;  %v4489_v21 = vmax.f32 %v1892_v42, %v3537_v23  ;;  %v2130_v36 = vcombine.high %v2122_v39, %v2122_v39  ;;  %v3592_v18 = vrot.slane %v2122_v39, 9 }
 0x3c7   : > { %v1908_v22 = vrot.slane %v1894_v57, %v4117_v47  ;;  %v1909_v15 = vcombine.high %v1901_v3, %v1901_v3  ;;  %v3540_v25 = vrot.slane %v1901_v3, 9  ;;  %v2891_v55 = vmax.f32 %v4437_v59, %v2819_v29 }
 0x3c8   : > { %v2131_v31 = vcombine.high %v2129_v53, %v2129_v53  ;;  %v3594_v11 = vrot.slane %v2129_v53, 9  ;;  %v3593_v13 = vrot.slane %v2130_v36, 9  ;;  %v2820_v5 = vmax.f32 %v2122_v39, %v3592_v18 }
 0x3c9   : > { %v1910_v2 = vcombine.high %v1908_v22, %v1908_v22  ;;  %v3542_v50 = vrot.slane %v1908_v22, 9  ;;  %v3541_v61 = vrot.slane %v1909_v15, 9  ;;  %v2768_v1 = vmax.f32 %v1901_v3, %v3540_v25 }
 0x3ca   : > { %v2132_v32 = vcombine.high %v1620_v19, %v1620_v19  ;;  %v3167_v42 = vrot.slane %v2889_v12, %v3760_v7  ;;  %v3595_v23 = vrot.slane %v2131_v31, 9  ;;  %v2821_v4 = vmax.f32 %v2130_v36, %v3593_v13 }
 0x3cb   : > { %v3543_v17 = vrot.slane %v1910_v2, 9  ;;  %v4495_v57 = vrot.slane %v2890_v30, %v3760_v7  ;;  %v4497_v52 = vmax.f32 %v2129_v53, %v3594_v11  ;;  %v2892_v49 = vmax.f32 %v4443_v60, %v2820_v5  ;;  %v1621_v53 = vpop.trf.xlu0 }
 0x3cc   : > { %v2769_v39 = vmax.f32 %v1909_v15, %v3541_v61  ;;  %v2893_v18 = vmax.f32 %v4446_v10, %v2821_v4  ;;  %v2770_v43 = vmax.f32 %v1908_v22, %v3542_v50  ;;  %v2864_v29 = vmax.f32 %v4470_v16, %v2768_v1 }
 0x3cd   : > { %v2771_v59 = vmax.f32 %v1910_v2, %v3543_v17  ;;  %v4503_v3 = vmax.f32 %v4455_v38, %v3538_v24  ;;  %v2139_v36 = vrot.slane %v1620_v19, %v4117_v47  ;;  %v2146_v30 = vrot.slane %v2132_v32, %v4117_v47  ;;  %v1591_v38 = vpop.trf.xlu1 }
 0x3ce   : > { %v2865_v12 = vmax.f32 %v4474_v9, %v2769_v39  ;;  %v4509_v11 = vrot.slane %v2891_v55, %v3760_v7  ;;  %v4512_v60 = vsel %vm3224_vm12, %v3167_v42, %v3163_v48  ;;  %v4514_v4 = vmax.f32 %v1893_v51, %v3539_v28 }
 0x3cf   : > { %v4516_v17 = vmax.f32 %v2131_v31, %v3595_v23  ;;  %v4521_v1 = vrot.slane %v2892_v49, %v3760_v7  ;;  %v2147_v2 = vcombine.high %v2139_v36, %v2139_v36  ;;  %v2863_v10 = vmax.f32 %v4382_v54, %v4450_v27  ;;  %v1622_v13 = vpop.trf.xlu0 }
 0x3d0   : > { %v4526_v5 = vrot.slane %v2893_v18, %v3760_v7  ;;  %v2866_v9 = vmax.f32 %v4476_v44, %v2770_v43  ;;  %v2867_v51 = vmax.f32 %v4478_v14, %v2771_v59  ;;  %v3067_v48 = vrot.slane %v2864_v29, %v3760_v7 }
 0x3d1   : > { %v3071_v24 = vrot.slane %v2865_v12, %v3760_v7  ;;  %v2148_v28 = vcombine.high %v2146_v30, %v2146_v30  ;;  %v3596_v22 = vrot.slane %v2139_v36, 9  ;;  %v3598_v49 = vrot.slane %v2146_v30, 9 }
 0x3d2   : > { %v4681_v31 = vmax.f32 %v4371_v6, %v4439_v35  ;;  %v3246_v27 = vsel %vm3226_vm13, %v4421_v33, %v4428_v20  ;;  %v1911_v15 = vcombine.high %v1591_v38, %v1591_v38  ;;  %v1918_v43 = vrot.slane %v1591_v38, %v4117_v47 }
 0x3d3   : > { %v3597_v44 = vrot.slane %v2147_v2, 9  ;;  %v3063_v14 = vrot.slane %v2863_v10, %v3760_v7  ;;  %v3247_v25 = vsel %vm3228_vm14, %v4425_v34, %v3246_v27  ;;  %v2149_v19 = vcombine.high %v1621_v53, %v1621_v53 }
 0x3d4   : > { %v3059_v54 = vrot.slane %v4681_v31, %v3760_v7  ;;  %v3248_v50 = vsel %vm3230_vm15, %v4460_v0, %v3247_v25  ;;  %v1925_v6 = vrot.slane %v1911_v15, %v4117_v47  ;;  %v1926_v35 = vcombine.high %v1918_v43, %v1918_v43  ;;  %v1623_v15 = vpop.trf.xlu0 }
 0x3d5   : > { %v3544_v55 = vrot.slane %v1918_v43, 9  ;;  %v3599_v61 = vrot.slane %v2148_v28, 9  ;;  %v3249_v33 = vsel %vm3232_vm0, %v4468_v63, %v3248_v50  ;;  %v2156_v20 = vrot.slane %v1621_v53, %v4117_v47 }
 0x3d6   : > { %v2163_v32 = vrot.slane %v2149_v19, %v4117_v47  ;;  %v3250_v42 = vsel %vm3234_vm1, %v3059_v54, %v3249_v33  ;;  %v1927_v34 = vcombine.high %v1925_v6, %v1925_v6  ;;  %v3545_v23 = vrot.slane %v1926_v35, 9 }
 0x3d7   : > { %v3546_v39 = vrot.slane %v1925_v6, 9  ;;  %v3251_v18 = vsel %vm3236_vm2, %v3063_v14, %v3250_v42  ;;  %v2772_v0 = vmax.f32 %v1918_v43, %v3544_v55  ;;  %v2164_v59 = vcombine.high %v2156_v20, %v2156_v20 }
 0x3d8   : > { %v2165_v29 = vcombine.high %v2163_v32, %v2163_v32  ;;  %v3075_v12 = vrot.slane %v2866_v9, %v3760_v7  ;;  %v3079_v10 = vrot.slane %v2867_v51, %v3760_v7  ;;  %3297 = vxpose.xlu0.b32.cont [3/8] (short) (narrow) %v3251_v18, 8  ;;  %v3547_v63 = vrot.slane %v1927_v34, 9 }
 0x3d9   : > { %v2166_v38 = vcombine.high %v1622_v13, %v1622_v13  ;;  %v3252_v53 = vsel %vm3224_vm12, %v3071_v24, %v3067_v48  ;;  %v2773_v31 = vmax.f32 %v1926_v35, %v3545_v23  ;;  %v2774_v27 = vmax.f32 %v1925_v6, %v3546_v39 }
 0x3da   : > { %v3600_v54 = vrot.slane %v2156_v20, 9  ;;  %v2824_v25 = vmax.f32 %v2139_v36, %v3596_v22  ;;  %v2825_v19 = vmax.f32 %v2147_v2, %v3597_v44  ;;  %v2826_v50 = vmax.f32 %v2146_v30, %v3598_v49 }
 0x3db   : > { %v2827_v14 = vmax.f32 %v2148_v28, %v3599_v61  ;;  %v2868_v43 = vmax.f32 %v4485_v37, %v2772_v0  ;;  %v3601_v55 = vrot.slane %v2164_v59, 9  ;;  %v3602_v33 = vrot.slane %v2163_v32, 9 }
 0x3dc   : > { %v3603_v9 = vrot.slane %v2165_v29, 9  ;;  %v2775_v42 = vmax.f32 %v1927_v34, %v3547_v63  ;;  %v2173_v51 = vrot.slane %v1622_v13, %v4117_v47  ;;  %v2180_v18 = vrot.slane %v2166_v38, %v4117_v47 }
 0x3dd   : > { %v2183_v16 = vcombine.high %v1623_v15, %v1623_v15  ;;  %v2869_v48 = vmax.f32 %v4489_v21, %v2773_v31  ;;  %v2870_v24 = vmax.f32 %v4503_v3, %v2774_v27  ;;  %v4560_v6 = vmax.f32 %v2156_v20, %v3600_v54 }
 0x3de   : > { %v2190_v36 = vrot.slane %v1623_v15, %v4117_v47  ;;  %v2181_v30 = vcombine.high %v2173_v51, %v2173_v51  ;;  %v2182_v2 = vcombine.high %v2180_v18, %v2180_v18  ;;  %v3604_v37 = vrot.slane %v2173_v51, 9 }
 0x3df   : > { %v3606_v28 = vrot.slane %v2180_v18, 9  ;;  %v3083_v22 = vrot.slane %v2868_v43, %v3760_v7  ;;  %v2197_v49 = vrot.slane %v2183_v16, %v4117_v47  ;;  %v4565_v23 = vmax.f32 %v2164_v59, %v3601_v55 }
 0x3e0   : > { %v2198_v44 = vcombine.high %v2190_v36, %v2190_v36  ;;  %v3608_v13 = vrot.slane %v2190_v36, 9  ;;  %v3605_v35 = vrot.slane %v2181_v30, 9  ;;  %v3607_v61 = vrot.slane %v2182_v2, 9 }
 0x3e1   : > { %v2832_v34 = vmax.f32 %v2173_v51, %v3604_v37  ;;  %v2834_v21 = vmax.f32 %v2180_v18, %v3606_v28  ;;  %v2199_v3 = vcombine.high %v2197_v49, %v2197_v49  ;;  %v2871_v39 = vmax.f32 %v4514_v4, %v2775_v42  ;;  %v4687_v28 = vld [vmem:[#allocation7_spill] sm:$0xff] }
 0x3e2   : > { %v3609_v20 = vrot.slane %v2198_v44, 9  ;;  %v2833_v0 = vmax.f32 %v2181_v30, %v3605_v35  ;;  %v2835_v63 = vmax.f32 %v2182_v2, %v3607_v61  ;;  %v3610_v31 = vrot.slane %v2197_v49, 9  ;;  %v4686_v2 = vld [vmem:[#allocation9_spill] sm:$0xff] }
 0x3e3   : > { %v2896_v38 = vmax.f32 %v2824_v25, %v2832_v34  ;;  %v3087_v27 = vrot.slane %v2869_v48, %v3760_v7  ;;  %v2830_v54 = vmax.f32 %v2163_v32, %v3602_v33  ;;  %v4569_v47 = vmax.f32 %v2165_v29, %v3603_v9  ;;  %v4691_v34 = vld [vmem:[#allocation8_spill] sm:$0xff] }
 0x3e4   : > { %v3253_v16 = vsel %vm3226_vm13, %v3075_v12, %v3252_v53  ;;  %v2897_v15 = vmax.f32 %v2825_v19, %v2833_v0  ;;  %v2898_v43 = vmax.f32 %v2826_v50, %v2834_v21  ;;  %v2836_v51 = vmax.f32 %v2190_v36, %v3608_v13  ;;  %v4689_v13 = vld [vmem:[#allocation6_spill] sm:$0xff] }
 0x3e5   : > { %v3091_v59 = vrot.slane %v2870_v24, %v3760_v7  ;;  %v2899_v55 = vmax.f32 %v2827_v14, %v2835_v63  ;;  %v3611_v18 = vrot.slane %v2199_v3, 9  ;;  %v2837_v37 = vmax.f32 %v2198_v44, %v3609_v20  ;;  %v4688_v44 = vld [vmem:[#allocation4_spill] sm:$0xff] }
 0x3e6   : > { %v3095_v4 = vrot.slane %v2871_v39, %v3760_v7  ;;  %v3195_v25 = vrot.slane %v2896_v38, %v3760_v7  ;;  %v2838_v42 = vmax.f32 %v2197_v49, %v3610_v31  ;;  %v3254_v48 = vsel %vm3228_vm14, %v3079_v10, %v3253_v16  ;;  %v4692_v39 = vld [vmem:[#allocation10_spill] sm:$0xff]  ;;  %v4693_v31 = vld [vmem:[#allocation11_spill] sm:$0xff]  ;;  %v4694_v16 = vld [vmem:[#allocation12_spill] sm:$0xff] }
 0x3e7   : > { %v2879_v32 = vmax.f32 %v4198_v62, %v4250_v26  ;;  %v3199_v29 = vrot.slane %v2897_v15, %v3760_v7  ;;  %v3255_v12 = vsel %vm3230_vm15, %v3083_v22, %v3254_v48  ;;  %v4682_v53 = vmax.f32 %v4194_v8, %v4225_v58  ;;  %v4683_v58 = vld [vmem:[#allocation2_spill] sm:$0xff] }
 0x3e8   : > { %v3260_v50 = vsel %vm3226_vm13, %v4242_v40, %v4248_v46  ;;  %v3203_v14 = vrot.slane %v2898_v43, %v3760_v7  ;;  %v2900_v10 = vmax.f32 %v4560_v6, %v2836_v51  ;;  %v3256_v33 = vsel %vm3232_vm0, %v3087_v27, %v3255_v12  ;;  %v4684_v46 = vld [vmem:[#allocation3_spill] sm:$0xff]  ;;  %v4685_v6 = vld [vmem:[#allocation5_spill] sm:$0xff] }
 0x3e9   : > { %v3123_v19 = vrot.slane %v4682_v53, %v3760_v7  ;;  %v3261_v62 = vsel %vm3228_vm14, %v4245_v56, %v3260_v50  ;;  %v3207_v26 = vrot.slane %v2899_v55, %v3760_v7  ;;  %v3257_v9 = vsel %vm3234_vm1, %v3091_v59, %v3256_v33 }
 0x3ea   : > { %v3127_v8 = vrot.slane %v2879_v32, %v3760_v7  ;;  %v3262_v24 = vsel %vm3230_vm15, %v4683_v58, %v3261_v62  ;;  %v3258_v40 = vsel %vm3236_vm2, %v3095_v4, %v3257_v9  ;;  %v2887_v30 = vmax.f32 %v4685_v6, %v4384_v45 }
 0x3eb   : > { %v3263_v36 = vsel %vm3232_vm0, %v4684_v46, %v3262_v24  ;;  %v3267_v56 = vsel %vm3226_vm13, %v4687_v28, %v4686_v2  ;;  %v3280_v22 = vsel %vm3224_vm12, %v3199_v29, %v3195_v25  ;;  %3298 = vxpose.xlu0.b32.cont [4/8] (short) (narrow) %v3258_v40, 8  ;;  %v4690_v35 = vmax.f32 %v4688_v44, %v4689_v13 }
 0x3ec   : > { %v3264_v49 = vsel %vm3234_vm1, %v3123_v19, %v3263_v36  ;;  %v3268_v21 = vsel %vm3228_vm14, %v4691_v34, %v3267_v56  ;;  %v2839_v20 = vmax.f32 %v2199_v3, %v3611_v18  ;;  %v2901_v45 = vmax.f32 %v4565_v23, %v2837_v37 }
 0x3ed   : > { %v3155_v61 = vrot.slane %v4690_v35, %v3760_v7  ;;  %v3269_v0 = vsel %vm3230_vm15, %v4692_v39, %v3268_v21  ;;  %v3274_v63 = vsel %vm3226_vm13, %v4495_v57, %v4512_v60  ;;  %v3211_v38 = vrot.slane %v2900_v10, %v3760_v7 }
 0x3ee   : > { %v3270_v27 = vsel %vm3232_vm0, %v4693_v31, %v3269_v0  ;;  %v2895_v15 = vmax.f32 %v4694_v16, %v4516_v17  ;;  %v3275_v3 = vsel %vm3228_vm14, %v4509_v11, %v3274_v63  ;;  %v3265_v23 = vsel %vm3236_vm2, %v3127_v8, %v3264_v49 }
 0x3ef   : > { %v3159_v43 = vrot.slane %v2887_v30, %v3760_v7  ;;  %v3276_v51 = vsel %vm3230_vm15, %v4521_v1, %v3275_v3  ;;  %v3281_v57 = vsel %vm3226_vm13, %v3203_v14, %v3280_v22  ;;  %v2902_v60 = vmax.f32 %v2830_v54, %v2838_v42  ;;  %3299 = vxpose.xlu0.b32.cont [5/8] (short) (narrow) %v3265_v23, 8 }
 0x3f0   : > { %v3271_v59 = vsel %vm3234_vm1, %v3155_v61, %v3270_v27  ;;  %v4695_v17 = vmax.f32 %v4462_v41, %v4497_v52  ;;  %v3282_v11 = vsel %vm3228_vm14, %v3207_v26, %v3281_v57  ;;  %v3215_v18 = vrot.slane %v2901_v45, %v3760_v7 }
 0x3f1   : > { %v3277_v37 = vsel %vm3232_vm0, %v4526_v5, %v3276_v51  ;;  %v3283_v1 = vsel %vm3230_vm15, %v3211_v38, %v3282_v11  ;;  %v3272_v54 = vsel %vm3236_vm2, %v3159_v43, %v3271_v59  ;;  %v3191_v4 = vrot.slane %v2895_v15, %v3760_v7 }
 0x3f2   : > { %v3187_v55 = vrot.slane %v4695_v17, %v3760_v7  ;;  %v2903_v25 = vmax.f32 %v4569_v47, %v2839_v20  ;;  %v3219_v41 = vrot.slane %v2902_v60, %v3760_v7  ;;  %v3284_v42 = vsel %vm3232_vm0, %v3215_v18, %v3283_v1 }
 0x3f3   : > { %3300 = vxpose.xlu0.b32.cont [6/8] (short) (narrow) %v3272_v54, 8 }
 0x3f4   : > { %v3278_v52 = vsel %vm3234_vm1, %v3187_v55, %v3277_v37  ;;  %v3223_v32 = vrot.slane %v2903_v25, %v3760_v7  ;;  %v3285_v5 = vsel %vm3234_vm1, %v3219_v41, %v3284_v42 }
 0x3f5   : > { %v3279_v48 = vsel %vm3236_vm2, %v3191_v4, %v3278_v52 }
 0x3f6   : > { %v3286_v29 = vsel %vm3236_vm2, %v3223_v32, %v3285_v5 }
 0x3f7   : > { %3301 = vxpose.xlu0.b32.cont [7/8] (short) (narrow) %v3279_v48, 8 }
 0x3fb   : > { %3302 = vxpose.xlu0.b32.end [8/8] (short) (narrow) %v3286_v29, 8 }
 0x45b   : > { %v3311_v47 = vpop.trf.xlu0 }
 0x45c   : > { %3328 = vst.msk [vmem:[%s289_s13] sm:$0xff] %vm3327_vm3, %v3311_v47 }
 0x45d PF: > { %s18_s24 = sadd.s32 1, %s3643_s24  }
 0x45e   : > { %p15_p4 = scmp.ge.s32.totalorder %s18_s24, 4  }
 0x460   :  { %17 = sbr.rel (!%p15_p4) target bundleno = 1 (0x1), region = 109 }

</bundles_post_ra>
